<compile_context>
chip_gen: v5e
topology: v5e:2x2
jax: 0.10.0
libtpu: 0.0.40
codegen_flags: <defaults>
</compile_context>

<pallas_src>
import functools

import numpy as np
import jax
import jax.numpy as jnp
from jax.experimental import pallas as pl
from jax.experimental.pallas import tpu as pltpu

_VMEM_BUDGET = 20 * 2**20  # per-kernel working-set target; fits v5e/v6e/v7x


def _itemsize(dt):
    return np.dtype(dt).itemsize


# ---------------------------------------------------------------------------
# Fast path: stride == kernel  (non-overlapping taps -> fused depth-to-space)
# ---------------------------------------------------------------------------

def _fast_kernel(w_ref, s_ref, b_ref, x_ref, o_ref, *, kH, kW, tr, Wout):
    # w_ref: (kH, kW, tco, Cin)   resident weight taps
    # s_ref: (kW, W, Wout)        0/1 lane-scatter matrices (w -> w*kW + kw)
    # b_ref: (tco, 1)             f32 bias
    # x_ref: (1, Cin, tr, W)      tr input rows of one batch element
    # o_ref: (1, tco, tr*kH*Wout) output rows, already in final NCHW memory order
    bias = b_ref[...]
    svals = [s_ref[kw] for kw in range(kW)]
    wvals = [[w_ref[kh, kw] for kw in range(kW)] for kh in range(kH)]
    for i in range(tr):                                   # static unroll
        x_row = x_ref[0, :, i, :]                         # (Cin, W)
        # scatter input columns onto interleaved output lanes (one MXU pass per kw)
        xsp = [jnp.dot(x_row, svals[kw]) for kw in range(kW)]      # (Cin, Wout)
        for kh in range(kH):
            acc = None
            for kw in range(kW):
                p = jnp.dot(wvals[kh][kw], xsp[kw],
                            preferred_element_type=jnp.float32)    # (tco, Wout)
                acc = p if acc is None else acc + p
            off = (i * kH + kh) * Wout                    # static lane offset
            o_ref[0, :, off:off + Wout] = (acc + bias).astype(o_ref.dtype)


def _pick_fast_tiles(N, Cin, Cout, H, W, kH, kW, in_bytes, out_bytes):
    Wout = W * kW
    tr_cands = [d for d in range(1, H + 1)
                if H % d == 0 and (d % 8 == 0 or d == H)
                and ((d * kH * Wout) % 128 == 0 or d == H)]
    tco_cands = [d for d in range(1, Cout + 1)
                 if Cout % d == 0 and (d % 8 == 0 or d == Cout)]

    def vmem(tr, tco):
        resident = 2 * (kH * kW * tco * Cin + kW * W * Wout) * in_bytes + 2 * tco * 4
        return (resident + 2 * Cin * tr * W * in_bytes
                + 2 * tco * tr * kH * Wout * out_bytes)

    for tco in sorted(tco_cands, reverse=True):
        fits = [d for d in tr_cands if vmem(d, tco) <= _VMEM_BUDGET]
        if not fits:
            continue
        # prefer >= 4 grid steps (megacore / pipelining) and a bounded unroll
        enough = [d for d in fits if d <= 32 and N * (Cout // tco) * (H // d) >= 4]
        pool = enough or [d for d in fits if d <= 32] or fits
        tr = max(pool)
        return tr, tco, vmem(tr, tco)
    tr, tco = min(tr_cands), min(tco_cands)
    return tr, tco, vmem(tr, tco)


def _upsample_fast(x, weight, bias, *, compute_dtype=None):
    N, Cin, H, W = x.shape
    _, Cout, kH, kW = weight.shape
    cdt = x.dtype if compute_dtype is None else compute_dtype
    in_b, out_b = _itemsize(cdt), _itemsize(x.dtype)
    tr, tco, est = _pick_fast_tiles(N, Cin, Cout, H, W, kH, kW, in_b, out_b)
    if tr > 64:            # pathological H: avoid a huge static unroll
        return None
    Wout = W * kW
    Hout, Wout_total = H * kH, W * kW

    wt = jnp.transpose(weight, (2, 3, 1, 0)).astype(cdt)           # (kH,kW,Cout,Cin)
    scat = (jnp.arange(Wout)[None, None, :] ==
            (jnp.arange(W)[None, :, None] * kW
             + jnp.arange(kW)[:, None, None])).astype(cdt)         # (kW,W,Wout)
    b2 = bias.reshape(Cout, 1).astype(jnp.float32)
    xc = x.astype(cdt)

    flops = 2 * N * Cout * kH * kW * Cin * H * W + 2 * N * H * kW * Cin * W * Wout
    bytes_accessed = int(xc.size * in_b + wt.size * in_b
                         + N * Cout * Hout * Wout_total * out_b)

    out = pl.pallas_call(
        functools.partial(_fast_kernel, kH=kH, kW=kW, tr=tr, Wout=Wout),
        out_shape=jax.ShapeDtypeStruct((N, Cout, H * kH * Wout), x.dtype),
        grid=(N, Cout // tco, H // tr),
        in_specs=[
            pl.BlockSpec((kH, kW, tco, Cin), lambda n, c, t: (0, 0, c, 0)),
            pl.BlockSpec((kW, W, Wout), lambda n, c, t: (0, 0, 0)),
            pl.BlockSpec((tco, 1), lambda n, c, t: (c, 0)),
            pl.BlockSpec((1, Cin, tr, W), lambda n, c, t: (n, 0, t, 0)),
        ],
        out_specs=pl.BlockSpec((1, tco, tr * kH * Wout), lambda n, c, t: (n, c, t)),
        compiler_params=pltpu.CompilerParams(
            dimension_semantics=("parallel", "parallel", "parallel"),
            vmem_limit_bytes=int(min(64 * 2**20, max(32 * 2**20, 2 * est)))),
        cost_estimate=pl.CostEstimate(flops=flops, transcendentals=0,
                                      bytes_accessed=bytes_accessed),
    )(wt, scat, b2, xc)
    # Pure metadata reshape: memory order already matches NCHW output.
    return out.reshape(N, Cout, Hout, Wout_total)


# ---------------------------------------------------------------------------
# General path: stride != kernel  (tap-reduction grid axis, no im2col)
# ---------------------------------------------------------------------------

def _general_kernel(wt_ref, b_ref, xp_ref, o_ref, xwin, acc, sem, *, tr, kW, KK, Wout):
    # wt_ref: (1, Cout, Cin)  flipped weight for the current tap
    # b_ref : (Cout, 1, 1)    f32 bias
    # xp_ref: HBM ref to the dilated+padded input (N, Cin, Hp, Wp)
    # o_ref : (1, Cout, tr, Wout) output tile (written only on the last tap)
    # xwin  : VMEM (Cin, tr, Wout) shifted input window
    # acc   : VMEM (Cout, tr, Wout) f32 accumulator
    n = pl.program_id(0)
    t = pl.program_id(1)
    kk = pl.program_id(2)
    kh = kk // kW
    kw = kk % kW

    cp = pltpu.make_async_copy(
        xp_ref.at[n, :, pl.ds(t * tr + kh, tr), pl.ds(kw, Wout)], xwin, sem)
    cp.start()

    @pl.when(kk == 0)
    def _():
        acc[...] = jnp.zeros_like(acc)

    cp.wait()
    w_tap = wt_ref[0]                                   # (Cout, Cin)

    def row_update(i):
        acc[:, i, :] += jnp.dot(w_tap, xwin[:, i, :],
                                preferred_element_type=jnp.float32)

    if tr <= 32:
        for i in range(tr):                             # static unroll
            row_update(i)
    else:
        # TODO(synk): double-buffer the window DMA to overlap with this loop.
        def body(i, carry):
            row_update(i)
            return carry
        jax.lax.fori_loop(0, tr, body, 0)

    @pl.when(kk == KK - 1)
    def _():
        o_ref[0] = (acc[...] + b_ref[...]).astype(o_ref.dtype)


def _pick_general_row_tile(Cin, Cout, Hout, Wout, in_bytes, out_bytes):
    cands = [d for d in range(1, Hout + 1)
             if Hout % d == 0 and (d % 8 == 0 or d == Hout)]

    def vmem(tr):
        return (Cin * tr * Wout * in_bytes              # window scratch
                + Cout * tr * Wout * 4                   # f32 accumulator
                + 2 * Cout * tr * Wout * out_bytes       # double-buffered out block
                + 2 * Cout * Cin * in_bytes)             # tap weights

    fits = [d for d in cands if vmem(d) <= _VMEM_BUDGET]
    pool = [d for d in fits if d <= 32] or fits or [min(cands)]
    tr = max(pool)
    return tr, vmem(tr)


def _upsample_general(x, weight, bias, stride, *, compute_dtype=None):
    N, Cin, H, W = x.shape
    _, Cout, kH, kW = weight.shape
    s = stride
    Hout, Wout = (H - 1) * s + kH, (W - 1) * s + kW
    cdt = x.dtype if compute_dtype is None else compute_dtype
    in_b, out_b = _itemsize(cdt), _itemsize(x.dtype)

    # Zero-dilate + pad once (input-sized); NO kH*kW x im2col blow-up in HBM.
    Hd, Wd = (H - 1) * s + 1, (W - 1) * s + 1
    xd = jnp.zeros((N, Cin, Hd, Wd), cdt).at[:, :, ::s, ::s].set(x.astype(cdt))
    xp = jnp.pad(xd, ((0, 0), (0, 0), (kH - 1, kH - 1), (kW - 1, kW - 1)))

    # Flipped-kernel correlation weights, one (Cout, Cin) matrix per tap.
    w_flip = weight[:, :, ::-1, ::-1]
    w_taps = jnp.transpose(w_flip, (2, 3, 1, 0)).reshape(kH * kW, Cout, Cin).astype(cdt)
    b3 = bias.reshape(Cout, 1, 1).astype(jnp.float32)

    KK = kH * kW
    tr, est = _pick_general_row_tile(Cin, Cout, Hout, Wout, in_b, out_b)

    flops = 2 * N * Cout * KK * Cin * Hout * Wout
    bytes_accessed = int(KK * xp.size * in_b + w_taps.size * in_b
                         + N * Cout * Hout * Wout * out_b)

    out = pl.pallas_call(
        functools.partial(_general_kernel, tr=tr, kW=kW, KK=KK, Wout=Wout),
        out_shape=jax.ShapeDtypeStruct((N, Cout, Hout, Wout), x.dtype),
        grid=(N, Hout // tr, KK),
        in_specs=[
            pl.BlockSpec((1, Cout, Cin), lambda n, t, kk: (kk, 0, 0)),
            pl.BlockSpec((Cout, 1, 1), lambda n, t, kk: (0, 0, 0)),
            pl.BlockSpec(memory_space=pl.ANY),          # dilated/padded input in HBM
        ],
        out_specs=pl.BlockSpec((1, Cout, tr, Wout), lambda n, t, kk: (n, 0, t, 0)),
        scratch_shapes=[
            pltpu.VMEM((Cin, tr, Wout), cdt),
            pltpu.VMEM((Cout, tr, Wout), jnp.float32),
            pltpu.SemaphoreType.DMA,
        ],
        compiler_params=pltpu.CompilerParams(
            dimension_semantics=("parallel", "parallel", "arbitrary"),
            vmem_limit_bytes=int(min(64 * 2**20, max(32 * 2**20, 2 * est)))),
        cost_estimate=pl.CostEstimate(flops=flops, transcendentals=0,
                                      bytes_accessed=bytes_accessed),
    )(w_taps, b3, xp)
    return out


# ---------------------------------------------------------------------------
# Public wrapper (matches nn.ConvTranspose2d(Cin, Cout, kernel, stride) fwd)
# ---------------------------------------------------------------------------

def upsample_conv_transpose(x, weight, bias, stride, *, compute_dtype=None):
    """x: (N, Cin, H, W); weight: (Cin, Cout, kH, kW); bias: (Cout,).

    Returns (N, Cout, (H-1)*s + kH, (W-1)*s + kW), identical to PyTorch.
    compute_dtype: optionally run MXU operands in bf16 (f32 accumulation).
    """
    N, Cin, H, W = x.shape
    Cin_w, Cout, kH, kW = weight.shape
    assert Cin_w == Cin
    if stride == kH and stride == kW:
        y = _upsample_fast(x, weight, bias, compute_dtype=compute_dtype)
        if y is not None:
            return y
    # TODO(synk): add a Cin-chunk reduction grid axis for extreme channel counts.
    return _upsample_general(x, weight, bias, stride, compute_dtype=compute_dtype)


if __name__ == "__main__":
    def _conv_transpose_ref(xn, wn, bn, stride):
        Nn, Cin, H, W = xn.shape
        _, Cout, kH, kW = wn.shape
        Hout, Wout = (H - 1) * stride + kH, (W - 1) * stride + kW
        ref = np.zeros((Nn, Cout, Hout, Wout), np.float32)
        for kh in range(kH):
            for kw in range(kW):
                contrib = np.einsum('nchw,cf->nfhw', xn, wn[:, :, kh, kw])
                ref[:, :, kh:kh + (H - 1) * stride + 1:stride,
                          kw:kw + (W - 1) * stride + 1:stride] += contrib
        return ref + bn[None, :, None, None]

    key = jax.random.PRNGKey(0)
    k1, k2, k3, k4, k5 = jax.random.split(key, 5)

    # Upsample(input_dim=4, output_dim=4, kernel=2, stride=2) on (2, 4, 16, 16)
    N, Cin, H, W = 2, 4, 16, 16
    Cout, kernel, stride = 4, 2, 2
    x = jax.random.normal(k1, (N, Cin, H, W), jnp.float32)
    fan = Cin * kernel * kernel
    weight = jax.random.uniform(k2, (Cin, Cout, kernel, kernel),
                                jnp.float32, -1.0, 1.0) / np.sqrt(fan)
    bias = jax.random.uniform(k3, (Cout,), jnp.float32, -1.0, 1.0) / np.sqrt(fan)

    y = jax.block_until_ready(upsample_conv_transpose(x, weight, bias, stride))
    ref = _conv_transpose_ref(np.asarray(x), np.asarray(weight), np.asarray(bias), stride)
    assert y.shape == ref.shape
    np.testing.assert_allclose(np.asarray(y), ref, rtol=1e-5, atol=1e-5)

    # General (overlapping-tap) path sanity check: kernel=3, stride=2, odd sizes
    H2, W2, kernel2, stride2 = 7, 7, 3, 2
    x2 = jax.random.normal(k4, (N, Cin, H2, W2), jnp.float32)
    w2 = jax.random.uniform(k5, (Cin, Cout, kernel2, kernel2),
                            jnp.float32, -1.0, 1.0) / np.sqrt(Cin * kernel2 * kernel2)
    y2 = jax.block_until_ready(upsample_conv_transpose(x2, w2, bias, stride2))
    ref2 = _conv_transpose_ref(np.asarray(x2), np.asarray(w2), np.asarray(bias), stride2)
    np.testing.assert_allclose(np.asarray(y2), ref2, rtol=1e-5, atol=1e-5)

    print("KERNEL_OK")
</pallas_src>

<mosaic_0001>
module attributes {stable_mosaic.version = 11 : i64} {
  func.func @_fast_kernel(%arg0: i32, %arg1: i32, %arg2: i32, %arg3: memref<2x2x4x4xf32, #tpu.memory_space<vmem>>, %arg4: memref<2x16x32xf32, #tpu.memory_space<vmem>>, %arg5: memref<4x1xf32, #tpu.memory_space<vmem>>, %arg6: memref<1x4x8x16xf32, #tpu.memory_space<vmem>>, %arg7: memref<1x4x512xf32, #tpu.memory_space<vmem>>) attributes {dimension_semantics = [#tpu.dimension_semantics<parallel>, #tpu.dimension_semantics<parallel>, #tpu.dimension_semantics<parallel>], iteration_bounds = array<i64: 2, 1, 2>, scalar_prefetch = 0 : i64, scratch_operands = 0 : i64, tpu.core_type = #tpu.core_type<tc>, window_params = [{transform_indices = @transform_0, window_bounds = array<i64: 2, 2, 4, 4>}, {pipeline_mode = #tpu.pipeline_mode<synchronous>, transform_indices = @transform_1, window_bounds = array<i64: 2, 16, 32>}, {transform_indices = @transform_2, window_bounds = array<i64: 4, 1>}, {transform_indices = @transform_3, window_bounds = array<i64: 1, 4, 8, 16>}, {transform_indices = @transform_4, window_bounds = array<i64: 1, 4, 512>}]} {
    %c0 = arith.constant 0 : index
    %c0_0 = arith.constant 0 : index
    %0 = vector.load %arg5[%c0, %c0_0] : memref<4x1xf32, #tpu.memory_space<vmem>>, vector<4x1xf32>
    %c0_1 = arith.constant 0 : index
    %c0_2 = arith.constant 0 : index
    %c0_3 = arith.constant 0 : index
    %1 = vector.load %arg4[%c0_1, %c0_2, %c0_3] : memref<2x16x32xf32, #tpu.memory_space<vmem>>, vector<1x16x32xf32>
    %2 = vector.shape_cast %1 : vector<1x16x32xf32> to vector<16x32xf32>
    %c1 = arith.constant 1 : index
    %c0_4 = arith.constant 0 : index
    %c0_5 = arith.constant 0 : index
    %3 = vector.load %arg4[%c1, %c0_4, %c0_5] : memref<2x16x32xf32, #tpu.memory_space<vmem>>, vector<1x16x32xf32>
    %4 = vector.shape_cast %3 : vector<1x16x32xf32> to vector<16x32xf32>
    %c0_6 = arith.constant 0 : index
    %c0_7 = arith.constant 0 : index
    %c0_8 = arith.constant 0 : index
    %c0_9 = arith.constant 0 : index
    %5 = vector.load %arg3[%c0_6, %c0_7, %c0_8, %c0_9] : memref<2x2x4x4xf32, #tpu.memory_space<vmem>>, vector<1x1x4x4xf32>
    %6 = vector.shape_cast %5 : vector<1x1x4x4xf32> to vector<4x4xf32>
    %c0_10 = arith.constant 0 : index
    %c1_11 = arith.constant 1 : index
    %c0_12 = arith.constant 0 : index
    %c0_13 = arith.constant 0 : index
    %7 = vector.load %arg3[%c0_10, %c1_11, %c0_12, %c0_13] : memref<2x2x4x4xf32, #tpu.memory_space<vmem>>, vector<1x1x4x4xf32>
    %8 = vector.shape_cast %7 : vector<1x1x4x4xf32> to vector<4x4xf32>
    %c1_14 = arith.constant 1 : index
    %c0_15 = arith.constant 0 : index
    %c0_16 = arith.constant 0 : index
    %c0_17 = arith.constant 0 : index
    %9 = vector.load %arg3[%c1_14, %c0_15, %c0_16, %c0_17] : memref<2x2x4x4xf32, #tpu.memory_space<vmem>>, vector<1x1x4x4xf32>
    %10 = vector.shape_cast %9 : vector<1x1x4x4xf32> to vector<4x4xf32>
    %c1_18 = arith.constant 1 : index
    %c1_19 = arith.constant 1 : index
    %c0_20 = arith.constant 0 : index
    %c0_21 = arith.constant 0 : index
    %11 = vector.load %arg3[%c1_18, %c1_19, %c0_20, %c0_21] : memref<2x2x4x4xf32, #tpu.memory_space<vmem>>, vector<1x1x4x4xf32>
    %12 = vector.shape_cast %11 : vector<1x1x4x4xf32> to vector<4x4xf32>
    %c0_22 = arith.constant 0 : index
    %c0_23 = arith.constant 0 : index
    %c0_24 = arith.constant 0 : index
    %c0_25 = arith.constant 0 : index
    %13 = vector.load %arg6[%c0_22, %c0_23, %c0_24, %c0_25] : memref<1x4x8x16xf32, #tpu.memory_space<vmem>>, vector<1x4x1x16xf32>
    %14 = vector.shape_cast %13 : vector<1x4x1x16xf32> to vector<4x16xf32>
    %cst = arith.constant dense<0.000000e+00> : vector<4x32xf32>
    %15 = tpu.matmul %14, %2, %cst {dimension_numbers = #tpu.dot_dimension_numbers<[1], [0], [0], [1], [0, 0, 1, 1], [], []>} : vector<4x16xf32>, vector<16x32xf32>, vector<4x32xf32> -> vector<4x32xf32>
    %cst_26 = arith.constant dense<0.000000e+00> : vector<4x32xf32>
    %16 = tpu.matmul %14, %4, %cst_26 {dimension_numbers = #tpu.dot_dimension_numbers<[1], [0], [0], [1], [0, 0, 1, 1], [], []>} : vector<4x16xf32>, vector<16x32xf32>, vector<4x32xf32> -> vector<4x32xf32>
    %cst_27 = arith.constant dense<0.000000e+00> : vector<4x32xf32>
    %17 = tpu.matmul %6, %15, %cst_27 {dimension_numbers = #tpu.dot_dimension_numbers<[1], [0], [0], [1], [0, 0, 1, 1], [], []>} : vector<4x4xf32>, vector<4x32xf32>, vector<4x32xf32> -> vector<4x32xf32>
    %cst_28 = arith.constant dense<0.000000e+00> : vector<4x32xf32>
    %18 = tpu.matmul %8, %16, %cst_28 {dimension_numbers = #tpu.dot_dimension_numbers<[1], [0], [0], [1], [0, 0, 1, 1], [], []>} : vector<4x4xf32>, vector<4x32xf32>, vector<4x32xf32> -> vector<4x32xf32>
    %19 = arith.addf %17, %18 : vector<4x32xf32>
    %20 = vector.broadcast %0 : vector<4x1xf32> to vector<4x32xf32>
    %21 = arith.addf %19, %20 : vector<4x32xf32>
    %c0_29 = arith.constant 0 : index
    %c0_30 = arith.constant 0 : index
    %c0_31 = arith.constant 0 : index
    %22 = vector.load %arg7[%c0_29, %c0_30, %c0_31] : memref<1x4x512xf32, #tpu.memory_space<vmem>>, vector<1x4x32xf32>
    %23 = vector.shape_cast %22 : vector<1x4x32xf32> to vector<4x32xf32>
    %24 = vector.shape_cast %21 : vector<4x32xf32> to vector<1x4x32xf32>
    tpu.vector_store %arg7[%c0_29, %c0_30, %c0_31], %24 {strides = array<i32>} : memref<1x4x512xf32, #tpu.memory_space<vmem>>, vector<1x4x32xf32>,
    %cst_32 = arith.constant dense<0.000000e+00> : vector<4x32xf32>
    %25 = tpu.matmul %10, %15, %cst_32 {dimension_numbers = #tpu.dot_dimension_numbers<[1], [0], [0], [1], [0, 0, 1, 1], [], []>} : vector<4x4xf32>, vector<4x32xf32>, vector<4x32xf32> -> vector<4x32xf32>
    %cst_33 = arith.constant dense<0.000000e+00> : vector<4x32xf32>
    %26 = tpu.matmul %12, %16, %cst_33 {dimension_numbers = #tpu.dot_dimension_numbers<[1], [0], [0], [1], [0, 0, 1, 1], [], []>} : vector<4x4xf32>, vector<4x32xf32>, vector<4x32xf32> -> vector<4x32xf32>
    %27 = arith.addf %25, %26 : vector<4x32xf32>
    %28 = vector.broadcast %0 : vector<4x1xf32> to vector<4x32xf32>
    %29 = arith.addf %27, %28 : vector<4x32xf32>
    %c0_34 = arith.constant 0 : index
    %c0_35 = arith.constant 0 : index
    %c32 = arith.constant 32 : index
    %30 = vector.load %arg7[%c0_34, %c0_35, %c32] : memref<1x4x512xf32, #tpu.memory_space<vmem>>, vector<1x4x32xf32>
    %31 = vector.shape_cast %30 : vector<1x4x32xf32> to vector<4x32xf32>
    %32 = vector.shape_cast %29 : vector<4x32xf32> to vector<1x4x32xf32>
    tpu.vector_store %arg7[%c0_34, %c0_35, %c32], %32 {strides = array<i32>} : memref<1x4x512xf32, #tpu.memory_space<vmem>>, vector<1x4x32xf32>,
    %c0_36 = arith.constant 0 : index
    %c0_37 = arith.constant 0 : index
    %c1_38 = arith.constant 1 : index
    %c0_39 = arith.constant 0 : index
    %33 = vector.load %arg6[%c0_36, %c0_37, %c1_38, %c0_39] : memref<1x4x8x16xf32, #tpu.memory_space<vmem>>, vector<1x4x1x16xf32>
    %34 = vector.shape_cast %33 : vector<1x4x1x16xf32> to vector<4x16xf32>
    %cst_40 = arith.constant dense<0.000000e+00> : vector<4x32xf32>
    %35 = tpu.matmul %34, %2, %cst_40 {dimension_numbers = #tpu.dot_dimension_numbers<[1], [0], [0], [1], [0, 0, 1, 1], [], []>} : vector<4x16xf32>, vector<16x32xf32>, vector<4x32xf32> -> vector<4x32xf32>
    %cst_41 = arith.constant dense<0.000000e+00> : vector<4x32xf32>
    %36 = tpu.matmul %34, %4, %cst_41 {dimension_numbers = #tpu.dot_dimension_numbers<[1], [0], [0], [1], [0, 0, 1, 1], [], []>} : vector<4x16xf32>, vector<16x32xf32>, vector<4x32xf32> -> vector<4x32xf32>
    %cst_42 = arith.constant dense<0.000000e+00> : vector<4x32xf32>
    %37 = tpu.matmul %6, %35, %cst_42 {dimension_numbers = #tpu.dot_dimension_numbers<[1], [0], [0], [1], [0, 0, 1, 1], [], []>} : vector<4x4xf32>, vector<4x32xf32>, vector<4x32xf32> -> vector<4x32xf32>
    %cst_43 = arith.constant dense<0.000000e+00> : vector<4x32xf32>
    %38 = tpu.matmul %8, %36, %cst_43 {dimension_numbers = #tpu.dot_dimension_numbers<[1], [0], [0], [1], [0, 0, 1, 1], [], []>} : vector<4x4xf32>, vector<4x32xf32>, vector<4x32xf32> -> vector<4x32xf32>
    %39 = arith.addf %37, %38 : vector<4x32xf32>
    %40 = vector.broadcast %0 : vector<4x1xf32> to vector<4x32xf32>
    %41 = arith.addf %39, %40 : vector<4x32xf32>
    %c0_44 = arith.constant 0 : index
    %c0_45 = arith.constant 0 : index
    %c64 = arith.constant 64 : index
    %42 = vector.load %arg7[%c0_44, %c0_45, %c64] : memref<1x4x512xf32, #tpu.memory_space<vmem>>, vector<1x4x32xf32>
    %43 = vector.shape_cast %42 : vector<1x4x32xf32> to vector<4x32xf32>
    %44 = vector.shape_cast %41 : vector<4x32xf32> to vector<1x4x32xf32>
    tpu.vector_store %arg7[%c0_44, %c0_45, %c64], %44 {strides = array<i32>} : memref<1x4x512xf32, #tpu.memory_space<vmem>>, vector<1x4x32xf32>,
    %cst_46 = arith.constant dense<0.000000e+00> : vector<4x32xf32>
    %45 = tpu.matmul %10, %35, %cst_46 {dimension_numbers = #tpu.dot_dimension_numbers<[1], [0], [0], [1], [0, 0, 1, 1], [], []>} : vector<4x4xf32>, vector<4x32xf32>, vector<4x32xf32> -> vector<4x32xf32>
    %cst_47 = arith.constant dense<0.000000e+00> : vector<4x32xf32>
    %46 = tpu.matmul %12, %36, %cst_47 {dimension_numbers = #tpu.dot_dimension_numbers<[1], [0], [0], [1], [0, 0, 1, 1], [], []>} : vector<4x4xf32>, vector<4x32xf32>, vector<4x32xf32> -> vector<4x32xf32>
    %47 = arith.addf %45, %46 : vector<4x32xf32>
    %48 = vector.broadcast %0 : vector<4x1xf32> to vector<4x32xf32>
    %49 = arith.addf %47, %48 : vector<4x32xf32>
    %c0_48 = arith.constant 0 : index
    %c0_49 = arith.constant 0 : index
    %c96 = arith.constant 96 : index
    %50 = vector.load %arg7[%c0_48, %c0_49, %c96] : memref<1x4x512xf32, #tpu.memory_space<vmem>>, vector<1x4x32xf32>
    %51 = vector.shape_cast %50 : vector<1x4x32xf32> to vector<4x32xf32>
    %52 = vector.shape_cast %49 : vector<4x32xf32> to vector<1x4x32xf32>
    tpu.vector_store %arg7[%c0_48, %c0_49, %c96], %52 {strides = array<i32>} : memref<1x4x512xf32, #tpu.memory_space<vmem>>, vector<1x4x32xf32>,
    %c0_50 = arith.constant 0 : index
    %c0_51 = arith.constant 0 : index
    %c2 = arith.constant 2 : index
    %c0_52 = arith.constant 0 : index
    %53 = vector.load %arg6[%c0_50, %c0_51, %c2, %c0_52] : memref<1x4x8x16xf32, #tpu.memory_space<vmem>>, vector<1x4x1x16xf32>
    %54 = vector.shape_cast %53 : vector<1x4x1x16xf32> to vector<4x16xf32>
    %cst_53 = arith.constant dense<0.000000e+00> : vector<4x32xf32>
    %55 = tpu.matmul %54, %2, %cst_53 {dimension_numbers = #tpu.dot_dimension_numbers<[1], [0], [0], [1], [0, 0, 1, 1], [], []>} : vector<4x16xf32>, vector<16x32xf32>, vector<4x32xf32> -> vector<4x32xf32>
    %cst_54 = arith.constant dense<0.000000e+00> : vector<4x32xf32>
    %56 = tpu.matmul %54, %4, %cst_54 {dimension_numbers = #tpu.dot_dimension_numbers<[1], [0], [0], [1], [0, 0, 1, 1], [], []>} : vector<4x16xf32>, vector<16x32xf32>, vector<4x32xf32> -> vector<4x32xf32>
    %cst_55 = arith.constant dense<0.000000e+00> : vector<4x32xf32>
    %57 = tpu.matmul %6, %55, %cst_55 {dimension_numbers = #tpu.dot_dimension_numbers<[1], [0], [0], [1], [0, 0, 1, 1], [], []>} : vector<4x4xf32>, vector<4x32xf32>, vector<4x32xf32> -> vector<4x32xf32>
    %cst_56 = arith.constant dense<0.000000e+00> : vector<4x32xf32>
    %58 = tpu.matmul %8, %56, %cst_56 {dimension_numbers = #tpu.dot_dimension_numbers<[1], [0], [0], [1], [0, 0, 1, 1], [], []>} : vector<4x4xf32>, vector<4x32xf32>, vector<4x32xf32> -> vector<4x32xf32>
    %59 = arith.addf %57, %58 : vector<4x32xf32>
    %60 = vector.broadcast %0 : vector<4x1xf32> to vector<4x32xf32>
    %61 = arith.addf %59, %60 : vector<4x32xf32>
    %c0_57 = arith.constant 0 : index
    %c0_58 = arith.constant 0 : index
    %c128 = arith.constant 128 : index
    %62 = vector.load %arg7[%c0_57, %c0_58, %c128] : memref<1x4x512xf32, #tpu.memory_space<vmem>>, vector<1x4x32xf32>
    %63 = vector.shape_cast %62 : vector<1x4x32xf32> to vector<4x32xf32>
    %64 = vector.shape_cast %61 : vector<4x32xf32> to vector<1x4x32xf32>
    tpu.vector_store %arg7[%c0_57, %c0_58, %c128], %64 {strides = array<i32>} : memref<1x4x512xf32, #tpu.memory_space<vmem>>, vector<1x4x32xf32>,
    %cst_59 = arith.constant dense<0.000000e+00> : vector<4x32xf32>
    %65 = tpu.matmul %10, %55, %cst_59 {dimension_numbers = #tpu.dot_dimension_numbers<[1], [0], [0], [1], [0, 0, 1, 1], [], []>} : vector<4x4xf32>, vector<4x32xf32>, vector<4x32xf32> -> vector<4x32xf32>
    %cst_60 = arith.constant dense<0.000000e+00> : vector<4x32xf32>
    %66 = tpu.matmul %12, %56, %cst_60 {dimension_numbers = #tpu.dot_dimension_numbers<[1], [0], [0], [1], [0, 0, 1, 1], [], []>} : vector<4x4xf32>, vector<4x32xf32>, vector<4x32xf32> -> vector<4x32xf32>
    %67 = arith.addf %65, %66 : vector<4x32xf32>
    %68 = vector.broadcast %0 : vector<4x1xf32> to vector<4x32xf32>
    %69 = arith.addf %67, %68 : vector<4x32xf32>
    %c0_61 = arith.constant 0 : index
    %c0_62 = arith.constant 0 : index
    %c160 = arith.constant 160 : index
    %70 = vector.load %arg7[%c0_61, %c0_62, %c160] : memref<1x4x512xf32, #tpu.memory_space<vmem>>, vector<1x4x32xf32>
    %71 = vector.shape_cast %70 : vector<1x4x32xf32> to vector<4x32xf32>
    %72 = vector.shape_cast %69 : vector<4x32xf32> to vector<1x4x32xf32>
    tpu.vector_store %arg7[%c0_61, %c0_62, %c160], %72 {strides = array<i32>} : memref<1x4x512xf32, #tpu.memory_space<vmem>>, vector<1x4x32xf32>,
    %c0_63 = arith.constant 0 : index
    %c0_64 = arith.constant 0 : index
    %c3 = arith.constant 3 : index
    %c0_65 = arith.constant 0 : index
    %73 = vector.load %arg6[%c0_63, %c0_64, %c3, %c0_65] : memref<1x4x8x16xf32, #tpu.memory_space<vmem>>, vector<1x4x1x16xf32>
    %74 = vector.shape_cast %73 : vector<1x4x1x16xf32> to vector<4x16xf32>
    %cst_66 = arith.constant dense<0.000000e+00> : vector<4x32xf32>
    %75 = tpu.matmul %74, %2, %cst_66 {dimension_numbers = #tpu.dot_dimension_numbers<[1], [0], [0], [1], [0, 0, 1, 1], [], []>} : vector<4x16xf32>, vector<16x32xf32>, vector<4x32xf32> -> vector<4x32xf32>
    %cst_67 = arith.constant dense<0.000000e+00> : vector<4x32xf32>
    %76 = tpu.matmul %74, %4, %cst_67 {dimension_numbers = #tpu.dot_dimension_numbers<[1], [0], [0], [1], [0, 0, 1, 1], [], []>} : vector<4x16xf32>, vector<16x32xf32>, vector<4x32xf32> -> vector<4x32xf32>
    %cst_68 = arith.constant dense<0.000000e+00> : vector<4x32xf32>
    %77 = tpu.matmul %6, %75, %cst_68 {dimension_numbers = #tpu.dot_dimension_numbers<[1], [0], [0], [1], [0, 0, 1, 1], [], []>} : vector<4x4xf32>, vector<4x32xf32>, vector<4x32xf32> -> vector<4x32xf32>
    %cst_69 = arith.constant dense<0.000000e+00> : vector<4x32xf32>
    %78 = tpu.matmul %8, %76, %cst_69 {dimension_numbers = #tpu.dot_dimension_numbers<[1], [0], [0], [1], [0, 0, 1, 1], [], []>} : vector<4x4xf32>, vector<4x32xf32>, vector<4x32xf32> -> vector<4x32xf32>
    %79 = arith.addf %77, %78 : vector<4x32xf32>
    %80 = vector.broadcast %0 : vector<4x1xf32> to vector<4x32xf32>
    %81 = arith.addf %79, %80 : vector<4x32xf32>
    %c0_70 = arith.constant 0 : index
    %c0_71 = arith.constant 0 : index
    %c192 = arith.constant 192 : index
    %82 = vector.load %arg7[%c0_70, %c0_71, %c192] : memref<1x4x512xf32, #tpu.memory_space<vmem>>, vector<1x4x32xf32>
    %83 = vector.shape_cast %82 : vector<1x4x32xf32> to vector<4x32xf32>
    %84 = vector.shape_cast %81 : vector<4x32xf32> to vector<1x4x32xf32>
    tpu.vector_store %arg7[%c0_70, %c0_71, %c192], %84 {strides = array<i32>} : memref<1x4x512xf32, #tpu.memory_space<vmem>>, vector<1x4x32xf32>,
    %cst_72 = arith.constant dense<0.000000e+00> : vector<4x32xf32>
    %85 = tpu.matmul %10, %75, %cst_72 {dimension_numbers = #tpu.dot_dimension_numbers<[1], [0], [0], [1], [0, 0, 1, 1], [], []>} : vector<4x4xf32>, vector<4x32xf32>, vector<4x32xf32> -> vector<4x32xf32>
    %cst_73 = arith.constant dense<0.000000e+00> : vector<4x32xf32>
    %86 = tpu.matmul %12, %76, %cst_73 {dimension_numbers = #tpu.dot_dimension_numbers<[1], [0], [0], [1], [0, 0, 1, 1], [], []>} : vector<4x4xf32>, vector<4x32xf32>, vector<4x32xf32> -> vector<4x32xf32>
    %87 = arith.addf %85, %86 : vector<4x32xf32>
    %88 = vector.broadcast %0 : vector<4x1xf32> to vector<4x32xf32>
    %89 = arith.addf %87, %88 : vector<4x32xf32>
    %c0_74 = arith.constant 0 : index
    %c0_75 = arith.constant 0 : index
    %c224 = arith.constant 224 : index
    %90 = vector.load %arg7[%c0_74, %c0_75, %c224] : memref<1x4x512xf32, #tpu.memory_space<vmem>>, vector<1x4x32xf32>
    %91 = vector.shape_cast %90 : vector<1x4x32xf32> to vector<4x32xf32>
    %92 = vector.shape_cast %89 : vector<4x32xf32> to vector<1x4x32xf32>
    tpu.vector_store %arg7[%c0_74, %c0_75, %c224], %92 {strides = array<i32>} : memref<1x4x512xf32, #tpu.memory_space<vmem>>, vector<1x4x32xf32>,
    %c0_76 = arith.constant 0 : index
    %c0_77 = arith.constant 0 : index
    %c4 = arith.constant 4 : index
    %c0_78 = arith.constant 0 : index
    %93 = vector.load %arg6[%c0_76, %c0_77, %c4, %c0_78] : memref<1x4x8x16xf32, #tpu.memory_space<vmem>>, vector<1x4x1x16xf32>
    %94 = vector.shape_cast %93 : vector<1x4x1x16xf32> to vector<4x16xf32>
    %cst_79 = arith.constant dense<0.000000e+00> : vector<4x32xf32>
    %95 = tpu.matmul %94, %2, %cst_79 {dimension_numbers = #tpu.dot_dimension_numbers<[1], [0], [0], [1], [0, 0, 1, 1], [], []>} : vector<4x16xf32>, vector<16x32xf32>, vector<4x32xf32> -> vector<4x32xf32>
    %cst_80 = arith.constant dense<0.000000e+00> : vector<4x32xf32>
    %96 = tpu.matmul %94, %4, %cst_80 {dimension_numbers = #tpu.dot_dimension_numbers<[1], [0], [0], [1], [0, 0, 1, 1], [], []>} : vector<4x16xf32>, vector<16x32xf32>, vector<4x32xf32> -> vector<4x32xf32>
    %cst_81 = arith.constant dense<0.000000e+00> : vector<4x32xf32>
    %97 = tpu.matmul %6, %95, %cst_81 {dimension_numbers = #tpu.dot_dimension_numbers<[1], [0], [0], [1], [0, 0, 1, 1], [], []>} : vector<4x4xf32>, vector<4x32xf32>, vector<4x32xf32> -> vector<4x32xf32>
    %cst_82 = arith.constant dense<0.000000e+00> : vector<4x32xf32>
    %98 = tpu.matmul %8, %96, %cst_82 {dimension_numbers = #tpu.dot_dimension_numbers<[1], [0], [0], [1], [0, 0, 1, 1], [], []>} : vector<4x4xf32>, vector<4x32xf32>, vector<4x32xf32> -> vector<4x32xf32>
    %99 = arith.addf %97, %98 : vector<4x32xf32>
    %100 = vector.broadcast %0 : vector<4x1xf32> to vector<4x32xf32>
    %101 = arith.addf %99, %100 : vector<4x32xf32>
    %c0_83 = arith.constant 0 : index
    %c0_84 = arith.constant 0 : index
    %c256 = arith.constant 256 : index
    %102 = vector.load %arg7[%c0_83, %c0_84, %c256] : memref<1x4x512xf32, #tpu.memory_space<vmem>>, vector<1x4x32xf32>
    %103 = vector.shape_cast %102 : vector<1x4x32xf32> to vector<4x32xf32>
    %104 = vector.shape_cast %101 : vector<4x32xf32> to vector<1x4x32xf32>
    tpu.vector_store %arg7[%c0_83, %c0_84, %c256], %104 {strides = array<i32>} : memref<1x4x512xf32, #tpu.memory_space<vmem>>, vector<1x4x32xf32>,
    %cst_85 = arith.constant dense<0.000000e+00> : vector<4x32xf32>
    %105 = tpu.matmul %10, %95, %cst_85 {dimension_numbers = #tpu.dot_dimension_numbers<[1], [0], [0], [1], [0, 0, 1, 1], [], []>} : vector<4x4xf32>, vector<4x32xf32>, vector<4x32xf32> -> vector<4x32xf32>
    %cst_86 = arith.constant dense<0.000000e+00> : vector<4x32xf32>
    %106 = tpu.matmul %12, %96, %cst_86 {dimension_numbers = #tpu.dot_dimension_numbers<[1], [0], [0], [1], [0, 0, 1, 1], [], []>} : vector<4x4xf32>, vector<4x32xf32>, vector<4x32xf32> -> vector<4x32xf32>
    %107 = arith.addf %105, %106 : vector<4x32xf32>
    %108 = vector.broadcast %0 : vector<4x1xf32> to vector<4x32xf32>
    %109 = arith.addf %107, %108 : vector<4x32xf32>
    %c0_87 = arith.constant 0 : index
    %c0_88 = arith.constant 0 : index
    %c288 = arith.constant 288 : index
    %110 = vector.load %arg7[%c0_87, %c0_88, %c288] : memref<1x4x512xf32, #tpu.memory_space<vmem>>, vector<1x4x32xf32>
    %111 = vector.shape_cast %110 : vector<1x4x32xf32> to vector<4x32xf32>
    %112 = vector.shape_cast %109 : vector<4x32xf32> to vector<1x4x32xf32>
    tpu.vector_store %arg7[%c0_87, %c0_88, %c288], %112 {strides = array<i32>} : memref<1x4x512xf32, #tpu.memory_space<vmem>>, vector<1x4x32xf32>,
    %c0_89 = arith.constant 0 : index
    %c0_90 = arith.constant 0 : index
    %c5 = arith.constant 5 : index
    %c0_91 = arith.constant 0 : index
    %113 = vector.load %arg6[%c0_89, %c0_90, %c5, %c0_91] : memref<1x4x8x16xf32, #tpu.memory_space<vmem>>, vector<1x4x1x16xf32>
    %114 = vector.shape_cast %113 : vector<1x4x1x16xf32> to vector<4x16xf32>
    %cst_92 = arith.constant dense<0.000000e+00> : vector<4x32xf32>
    %115 = tpu.matmul %114, %2, %cst_92 {dimension_numbers = #tpu.dot_dimension_numbers<[1], [0], [0], [1], [0, 0, 1, 1], [], []>} : vector<4x16xf32>, vector<16x32xf32>, vector<4x32xf32> -> vector<4x32xf32>
    %cst_93 = arith.constant dense<0.000000e+00> : vector<4x32xf32>
    %116 = tpu.matmul %114, %4, %cst_93 {dimension_numbers = #tpu.dot_dimension_numbers<[1], [0], [0], [1], [0, 0, 1, 1], [], []>} : vector<4x16xf32>, vector<16x32xf32>, vector<4x32xf32> -> vector<4x32xf32>
    %cst_94 = arith.constant dense<0.000000e+00> : vector<4x32xf32>
    %117 = tpu.matmul %6, %115, %cst_94 {dimension_numbers = #tpu.dot_dimension_numbers<[1], [0], [0], [1], [0, 0, 1, 1], [], []>} : vector<4x4xf32>, vector<4x32xf32>, vector<4x32xf32> -> vector<4x32xf32>
    %cst_95 = arith.constant dense<0.000000e+00> : vector<4x32xf32>
    %118 = tpu.matmul %8, %116, %cst_95 {dimension_numbers = #tpu.dot_dimension_numbers<[1], [0], [0], [1], [0, 0, 1, 1], [], []>} : vector<4x4xf32>, vector<4x32xf32>, vector<4x32xf32> -> vector<4x32xf32>
    %119 = arith.addf %117, %118 : vector<4x32xf32>
    %120 = vector.broadcast %0 : vector<4x1xf32> to vector<4x32xf32>
    %121 = arith.addf %119, %120 : vector<4x32xf32>
    %c0_96 = arith.constant 0 : index
    %c0_97 = arith.constant 0 : index
    %c320 = arith.constant 320 : index
    %122 = vector.load %arg7[%c0_96, %c0_97, %c320] : memref<1x4x512xf32, #tpu.memory_space<vmem>>, vector<1x4x32xf32>
    %123 = vector.shape_cast %122 : vector<1x4x32xf32> to vector<4x32xf32>
    %124 = vector.shape_cast %121 : vector<4x32xf32> to vector<1x4x32xf32>
    tpu.vector_store %arg7[%c0_96, %c0_97, %c320], %124 {strides = array<i32>} : memref<1x4x512xf32, #tpu.memory_space<vmem>>, vector<1x4x32xf32>,
    %cst_98 = arith.constant dense<0.000000e+00> : vector<4x32xf32>
    %125 = tpu.matmul %10, %115, %cst_98 {dimension_numbers = #tpu.dot_dimension_numbers<[1], [0], [0], [1], [0, 0, 1, 1], [], []>} : vector<4x4xf32>, vector<4x32xf32>, vector<4x32xf32> -> vector<4x32xf32>
    %cst_99 = arith.constant dense<0.000000e+00> : vector<4x32xf32>
    %126 = tpu.matmul %12, %116, %cst_99 {dimension_numbers = #tpu.dot_dimension_numbers<[1], [0], [0], [1], [0, 0, 1, 1], [], []>} : vector<4x4xf32>, vector<4x32xf32>, vector<4x32xf32> -> vector<4x32xf32>
    %127 = arith.addf %125, %126 : vector<4x32xf32>
    %128 = vector.broadcast %0 : vector<4x1xf32> to vector<4x32xf32>
    %129 = arith.addf %127, %128 : vector<4x32xf32>
    %c0_100 = arith.constant 0 : index
    %c0_101 = arith.constant 0 : index
    %c352 = arith.constant 352 : index
    %130 = vector.load %arg7[%c0_100, %c0_101, %c352] : memref<1x4x512xf32, #tpu.memory_space<vmem>>, vector<1x4x32xf32>
    %131 = vector.shape_cast %130 : vector<1x4x32xf32> to vector<4x32xf32>
    %132 = vector.shape_cast %129 : vector<4x32xf32> to vector<1x4x32xf32>
    tpu.vector_store %arg7[%c0_100, %c0_101, %c352], %132 {strides = array<i32>} : memref<1x4x512xf32, #tpu.memory_space<vmem>>, vector<1x4x32xf32>,
    %c0_102 = arith.constant 0 : index
    %c0_103 = arith.constant 0 : index
    %c6 = arith.constant 6 : index
    %c0_104 = arith.constant 0 : index
    %133 = vector.load %arg6[%c0_102, %c0_103, %c6, %c0_104] : memref<1x4x8x16xf32, #tpu.memory_space<vmem>>, vector<1x4x1x16xf32>
    %134 = vector.shape_cast %133 : vector<1x4x1x16xf32> to vector<4x16xf32>
    %cst_105 = arith.constant dense<0.000000e+00> : vector<4x32xf32>
    %135 = tpu.matmul %134, %2, %cst_105 {dimension_numbers = #tpu.dot_dimension_numbers<[1], [0], [0], [1], [0, 0, 1, 1], [], []>} : vector<4x16xf32>, vector<16x32xf32>, vector<4x32xf32> -> vector<4x32xf32>
    %cst_106 = arith.constant dense<0.000000e+00> : vector<4x32xf32>
    %136 = tpu.matmul %134, %4, %cst_106 {dimension_numbers = #tpu.dot_dimension_numbers<[1], [0], [0], [1], [0, 0, 1, 1], [], []>} : vector<4x16xf32>, vector<16x32xf32>, vector<4x32xf32> -> vector<4x32xf32>
    %cst_107 = arith.constant dense<0.000000e+00> : vector<4x32xf32>
    %137 = tpu.matmul %6, %135, %cst_107 {dimension_numbers = #tpu.dot_dimension_numbers<[1], [0], [0], [1], [0, 0, 1, 1], [], []>} : vector<4x4xf32>, vector<4x32xf32>, vector<4x32xf32> -> vector<4x32xf32>
    %cst_108 = arith.constant dense<0.000000e+00> : vector<4x32xf32>
    %138 = tpu.matmul %8, %136, %cst_108 {dimension_numbers = #tpu.dot_dimension_numbers<[1], [0], [0], [1], [0, 0, 1, 1], [], []>} : vector<4x4xf32>, vector<4x32xf32>, vector<4x32xf32> -> vector<4x32xf32>
    %139 = arith.addf %137, %138 : vector<4x32xf32>
    %140 = vector.broadcast %0 : vector<4x1xf32> to vector<4x32xf32>
    %141 = arith.addf %139, %140 : vector<4x32xf32>
    %c0_109 = arith.constant 0 : index
    %c0_110 = arith.constant 0 : index
    %c384 = arith.constant 384 : index
    %142 = vector.load %arg7[%c0_109, %c0_110, %c384] : memref<1x4x512xf32, #tpu.memory_space<vmem>>, vector<1x4x32xf32>
    %143 = vector.shape_cast %142 : vector<1x4x32xf32> to vector<4x32xf32>
    %144 = vector.shape_cast %141 : vector<4x32xf32> to vector<1x4x32xf32>
    tpu.vector_store %arg7[%c0_109, %c0_110, %c384], %144 {strides = array<i32>} : memref<1x4x512xf32, #tpu.memory_space<vmem>>, vector<1x4x32xf32>,
    %cst_111 = arith.constant dense<0.000000e+00> : vector<4x32xf32>
    %145 = tpu.matmul %10, %135, %cst_111 {dimension_numbers = #tpu.dot_dimension_numbers<[1], [0], [0], [1], [0, 0, 1, 1], [], []>} : vector<4x4xf32>, vector<4x32xf32>, vector<4x32xf32> -> vector<4x32xf32>
    %cst_112 = arith.constant dense<0.000000e+00> : vector<4x32xf32>
    %146 = tpu.matmul %12, %136, %cst_112 {dimension_numbers = #tpu.dot_dimension_numbers<[1], [0], [0], [1], [0, 0, 1, 1], [], []>} : vector<4x4xf32>, vector<4x32xf32>, vector<4x32xf32> -> vector<4x32xf32>
    %147 = arith.addf %145, %146 : vector<4x32xf32>
    %148 = vector.broadcast %0 : vector<4x1xf32> to vector<4x32xf32>
    %149 = arith.addf %147, %148 : vector<4x32xf32>
    %c0_113 = arith.constant 0 : index
    %c0_114 = arith.constant 0 : index
    %c416 = arith.constant 416 : index
    %150 = vector.load %arg7[%c0_113, %c0_114, %c416] : memref<1x4x512xf32, #tpu.memory_space<vmem>>, vector<1x4x32xf32>
    %151 = vector.shape_cast %150 : vector<1x4x32xf32> to vector<4x32xf32>
    %152 = vector.shape_cast %149 : vector<4x32xf32> to vector<1x4x32xf32>
    tpu.vector_store %arg7[%c0_113, %c0_114, %c416], %152 {strides = array<i32>} : memref<1x4x512xf32, #tpu.memory_space<vmem>>, vector<1x4x32xf32>,
    %c0_115 = arith.constant 0 : index
    %c0_116 = arith.constant 0 : index
    %c7 = arith.constant 7 : index
    %c0_117 = arith.constant 0 : index
    %153 = vector.load %arg6[%c0_115, %c0_116, %c7, %c0_117] : memref<1x4x8x16xf32, #tpu.memory_space<vmem>>, vector<1x4x1x16xf32>
    %154 = vector.shape_cast %153 : vector<1x4x1x16xf32> to vector<4x16xf32>
    %cst_118 = arith.constant dense<0.000000e+00> : vector<4x32xf32>
    %155 = tpu.matmul %154, %2, %cst_118 {dimension_numbers = #tpu.dot_dimension_numbers<[1], [0], [0], [1], [0, 0, 1, 1], [], []>} : vector<4x16xf32>, vector<16x32xf32>, vector<4x32xf32> -> vector<4x32xf32>
    %cst_119 = arith.constant dense<0.000000e+00> : vector<4x32xf32>
    %156 = tpu.matmul %154, %4, %cst_119 {dimension_numbers = #tpu.dot_dimension_numbers<[1], [0], [0], [1], [0, 0, 1, 1], [], []>} : vector<4x16xf32>, vector<16x32xf32>, vector<4x32xf32> -> vector<4x32xf32>
    %cst_120 = arith.constant dense<0.000000e+00> : vector<4x32xf32>
    %157 = tpu.matmul %6, %155, %cst_120 {dimension_numbers = #tpu.dot_dimension_numbers<[1], [0], [0], [1], [0, 0, 1, 1], [], []>} : vector<4x4xf32>, vector<4x32xf32>, vector<4x32xf32> -> vector<4x32xf32>
    %cst_121 = arith.constant dense<0.000000e+00> : vector<4x32xf32>
    %158 = tpu.matmul %8, %156, %cst_121 {dimension_numbers = #tpu.dot_dimension_numbers<[1], [0], [0], [1], [0, 0, 1, 1], [], []>} : vector<4x4xf32>, vector<4x32xf32>, vector<4x32xf32> -> vector<4x32xf32>
    %159 = arith.addf %157, %158 : vector<4x32xf32>
    %160 = vector.broadcast %0 : vector<4x1xf32> to vector<4x32xf32>
    %161 = arith.addf %159, %160 : vector<4x32xf32>
    %c0_122 = arith.constant 0 : index
    %c0_123 = arith.constant 0 : index
    %c448 = arith.constant 448 : index
    %162 = vector.load %arg7[%c0_122, %c0_123, %c448] : memref<1x4x512xf32, #tpu.memory_space<vmem>>, vector<1x4x32xf32>
    %163 = vector.shape_cast %162 : vector<1x4x32xf32> to vector<4x32xf32>
    %164 = vector.shape_cast %161 : vector<4x32xf32> to vector<1x4x32xf32>
    tpu.vector_store %arg7[%c0_122, %c0_123, %c448], %164 {strides = array<i32>} : memref<1x4x512xf32, #tpu.memory_space<vmem>>, vector<1x4x32xf32>,
    %cst_124 = arith.constant dense<0.000000e+00> : vector<4x32xf32>
    %165 = tpu.matmul %10, %155, %cst_124 {dimension_numbers = #tpu.dot_dimension_numbers<[1], [0], [0], [1], [0, 0, 1, 1], [], []>} : vector<4x4xf32>, vector<4x32xf32>, vector<4x32xf32> -> vector<4x32xf32>
    %cst_125 = arith.constant dense<0.000000e+00> : vector<4x32xf32>
    %166 = tpu.matmul %12, %156, %cst_125 {dimension_numbers = #tpu.dot_dimension_numbers<[1], [0], [0], [1], [0, 0, 1, 1], [], []>} : vector<4x4xf32>, vector<4x32xf32>, vector<4x32xf32> -> vector<4x32xf32>
    %167 = arith.addf %165, %166 : vector<4x32xf32>
    %168 = vector.broadcast %0 : vector<4x1xf32> to vector<4x32xf32>
    %169 = arith.addf %167, %168 : vector<4x32xf32>
    %c0_126 = arith.constant 0 : index
    %c0_127 = arith.constant 0 : index
    %c480 = arith.constant 480 : index
    %170 = vector.load %arg7[%c0_126, %c0_127, %c480] : memref<1x4x512xf32, #tpu.memory_space<vmem>>, vector<1x4x32xf32>
    %171 = vector.shape_cast %170 : vector<1x4x32xf32> to vector<4x32xf32>
    %172 = vector.shape_cast %169 : vector<4x32xf32> to vector<1x4x32xf32>
    tpu.vector_store %arg7[%c0_126, %c0_127, %c480], %172 {strides = array<i32>} : memref<1x4x512xf32, #tpu.memory_space<vmem>>, vector<1x4x32xf32>,
    return
  }
  func.func @transform_0(%arg0: i32, %arg1: i32, %arg2: i32) -> (i32, i32, i32, i32) {
    %c0_i32 = arith.constant 0 : i32
    %c0_i32_0 = arith.constant 0 : i32
    %c0_i32_1 = arith.constant 0 : i32
    %c0_i32_2 = arith.constant 0 : i32
    return %c0_i32, %c0_i32_0, %arg1, %c0_i32_1 : i32, i32, i32, i32
  }
  func.func @transform_1(%arg0: i32, %arg1: i32, %arg2: i32) -> (i32, i32, i32) {
    %c0_i32 = arith.constant 0 : i32
    %c0_i32_0 = arith.constant 0 : i32
    %c0_i32_1 = arith.constant 0 : i32
    %c0_i32_2 = arith.constant 0 : i32
    return %c0_i32, %c0_i32_0, %c0_i32_1 : i32, i32, i32
  }
  func.func @transform_2(%arg0: i32, %arg1: i32, %arg2: i32) -> (i32, i32) {
    %c0_i32 = arith.constant 0 : i32
    %c0_i32_0 = arith.constant 0 : i32
    return %arg1, %c0_i32 : i32, i32
  }
  func.func @transform_3(%arg0: i32, %arg1: i32, %arg2: i32) -> (i32, i32, i32, i32) {
    %c0_i32 = arith.constant 0 : i32
    %c0_i32_0 = arith.constant 0 : i32
    %c0_i32_1 = arith.constant 0 : i32
    return %arg0, %c0_i32, %arg2, %c0_i32_0 : i32, i32, i32, i32
  }
  func.func @transform_4(%arg0: i32, %arg1: i32, %arg2: i32) -> (i32, i32, i32) {
    %c0_i32 = arith.constant 0 : i32
    return %arg0, %arg1, %arg2 : i32, i32, i32
  }
}

</mosaic_0001>

<bundles_post_ra>
// kernel: tpu_custom_call.1
= control target key start
LH: loop header
LB: loop body
LE: loop exit
PB: predicated region body
PF: predicated region fallthrough
CT: control target
= control target key end

     0   :  { %s2621_s0 = inlined_call_operand.hbm [shape: f32[2,2,4,4], index: 0, kind: input, shape index: {}]   ;;  %s2622_s1 = inlined_call_operand.hbm [shape: f32[2,16,32], index: 1, kind: input, shape index: {}]   ;;  %s2623_s2 = inlined_call_operand.vmem [shape: f32[4,1], index: 2, kind: input, shape index: {}]   ;;  %s2624_s3 = inlined_call_operand.hbm [shape: f32[2,4,16,16], index: 3, kind: input, shape index: {}]   ;;  %s2625_s4 = inlined_call_operand.hbm [shape: f32[2,4,1024], index: 4, kind: output, shape index: {}]  }
   0x1   :  { %2636 = sst [smem:[#allocation18_spill]] %s2621_s0 }
   0x2   :  { %2637 = sst [smem:[#allocation19_spill]] %s2622_s1 }
   0x3   :  { %2638 = sst [smem:[#allocation20_spill]] %s2625_s4 }
   0x4   :  { %9 = vsyncpa [#allocation3], 0 }
   0x5   :  { %10 = vsyncpa [#allocation6], 0 }
   0x6   :  { %11 = vsyncpa [#allocation4], 0 }
   0x7   :  { %13 = vsyncpa [#allocation4 + $0x1], 0  ;;  %s2148_s15 = smov 0   ;;  %s2150_s16 = smov 0  }
   0x8   :  { %s2152_s17 = smov 0   ;;  %s2154_s18 = smov 0  }
   0x9   :  { %s2156_s19 = smov 0   ;;  %s2158_s20 = smov 0  }
   0xa   :  { %s2160_s21 = smov 0   ;;  %s2162_s22 = smov 0  }
   0xb LB: > { %2639 = sst [smem:[#allocation13_spill]] %s2082_s15  ;;  %s2189_s23 = sadd.s32 4294967295, %s2110_s22   ;;  %s2110_s22 = sphi %s2162_s22, %s2668_s22   ;;  %s2106_s21 = sphi %s2160_s21, %s2667_s21   ;;  %s2102_s20 = sphi %s2158_s20, %s2666_s20   ;;  %s2098_s19 = sphi %s2156_s19, %s2665_s19   ;;  %s2094_s18 = sphi %s2154_s18, %s2664_s18   ;;  %s2090_s17 = sphi %s2152_s17, %s2663_s17   ;;  %s2086_s16 = sphi %s2150_s16, %s2662_s16   ;;  %s2082_s15 = sphi %s2148_s15, %s2661_s15  }
   0xc   : > { %2640 = sst [smem:[#allocation14_spill]] %s2110_s22  ;;  %s1705_s24 = sadd.s32 4294967294, %s2110_s22  }
   0xd   : > { %p127_p0 = scmp.ne.s32.totalorder %s2090_s17, %s2086_s16  ;;  %p128_p1 = scmp.eq.s32.totalorder %s2110_s22, 0 }
   0xe   : > { %p133_p2 = scmp.ne.s32.totalorder %s2086_s16, %s2082_s15  ;;  %p134_p3 = scmp.eq.s32.totalorder %s2189_s23, 0 }
   0xf   : > { %p161_p4 = scmp.eq.s32.totalorder %s2189_s23, 3  ;;  %p2200_p5 = por %p128_p1, %p127_p0 }
  0x10   : > { %p167_p6 = scmp.eq.s32.totalorder %s1705_s24, 3  ;;  %p2206_p7 = por %p134_p3, %p133_p2 }
  0x11   : > { %p2210_p8 = por %p161_p4, %p127_p0  ;;  %p1706_p10 = scmp.ge.s32.totalorder %s2110_s22, 1 }
  0x12   : > { %p2214_p9 = por %p167_p6, %p133_p2  ;;  %p174_p11 = scmp.lt.s32.totalorder %s2110_s22, 5 }
  0x13   : > { %s2643_s28 = scalar_select %p2210_p8, 1, 0 }
  0x14   : > { %s2645_s29 = scalar_select %p2214_p9, 1, 0 }
  0x15   : > { %2644 = sst [smem:[#allocation15_spill]] %s2643_s28  ;;  %p2223_p12 = pnand %p1706_p10, %p174_p11 }
  0x16   : > { %2646 = sst [smem:[#allocation16_spill]] %s2645_s29  ;;  %s2112_s8 = smov [#allocation2]  }
  0x17   : > { %s2647_s0 = sld [smem:[#allocation18_spill]]  ;;  %s189_s9 = sshll.u32 %s2112_s8, 4  ;;  %s190_s9 = int_to_ptr.vmem [resolvable:$true] %s189_s9 }
  0x18   : > { %p1817_p13 = pneg %p2223_p12  ;;  %p1834_p1 = scmp.lt.s32.totalorder %s2110_s22, 4 }
  0x19   : > { %s2649_s1 = sld [smem:[#allocation19_spill]]  ;;  %s2113_s14 = smov 64  }
  0x1a   : > { %p1818_p0 = pnand %p1817_p13, %p134_p3  ;;  %p2237_p2 = pnand %p1834_p1, %p2200_p5 }
  0x1b   : > { %s2114_s24 = smov 4   ;;  %s2115_s30 = smov [#allocation5]  }
  0x1c   : > { %s203_s5 = sshll.u32 %s2115_s30, 4  ;;  %s2626_s8 = smov 128   ;;  %s204_s5 = int_to_ptr.vmem [resolvable:$true] %s203_s5 }
  0x1d   : > { %s187_s6 = sshll.u32 %s2647_s0, 4  ;;  %s2627_s10 = smov 8   ;;  %s188_s6 = int_to_ptr.hbm [resolvable:$true] %s187_s6 }
  0x1e   : > { %1820 = dma.hbm_to_vmem [thread:$0]  (!%p1818_p0), %s188_s6, 256, %s190_s9, [#allocation3], %s2113_s14, %s2113_s14, %s2114_s24  }
  0x1f   : > { %s201_s12 = sshll.u32 %s2649_s1, 4  ;;  %s31_s26 = sadd.s32 1, %s2102_s20  ;;  %s202_s12 = int_to_ptr.hbm [resolvable:$true] %s201_s12 }
  0x20   : > { %1823 = dma.hbm_to_vmem [thread:$0]  (!%p1818_p0), %s202_s12, 512, %s204_s5, [#allocation6], %s2626_s8, %s2626_s8, %s2627_s10  }
  0x21   : > { %s38_s11 = sadd.s32 1, %s2106_s21  ;;  %p32_p4 = scmp.ge.s32.totalorder %s31_s26, 2 }
  0x22   : > { %s224_s25 = sand.u32 1, %s2110_s22   ;;  %s226_s0 = sand.u32 1, %s2090_s17  }
  0x23   : > { %s2670_s26 = smov (%p32_p4, %s31_s26), 0  ;;  %s2672_s11 = smov (!%p32_p4, %s38_s11), %s2106_s21 }
  0x24   : > { %2651 = sst [smem:[#allocation17_spill]] %s2670_s26  ;;  %s116_s6 = ssub.s32 %s2102_s20, %s2670_s26 }
  0x25   : > { %s1711_s9 = sshll.u32 %s226_s0, 5  ;;  %p40_p5 = scmp.ge.s32.totalorder %s2672_s11, 2 }
  0x26   : > { %s1712_s14 = sshll.u32 %s2106_s21, 3  ;;  %s228_s24 = scalar_lea.vmem [#allocation7], %s1711_s9 }
  0x27   : > { %s237_s30 = sshll.u32 %s228_s24, 4  ;;  %s2674_s11 = smov (%p40_p5, %s2672_s11), 0  ;;  %s238_s30 = int_to_ptr.vmem [resolvable:$true] %s237_s30 }
  0x28   : > { %s232_s12 = sadd.s32 %s2102_s20, %s1712_s14  ;;  %s115_s5 = ssub.s32 %s2106_s21, %s2674_s11 }
  0x29   : > { %s1713_s8 = sshll.u32 %s232_s12, 3  ;;  %s117_s10 = sor.u32 %s116_s6, %s115_s5 }
  0x2a   : > { %s234_s26 = scalar_lea.hbm %s2624_s3, %s1713_s8  ;;  %p118_p6 = scmp.eq.s32.totalorder %s117_s10, 0 }
  0x2b   : > { %s235_s15 = sshll.u32 %s234_s26, 4  ;;  %s2652_s0 = sadd.s32 1, %s2090_s17  ;;  %s236_s15 = int_to_ptr.hbm [resolvable:$true] %s235_s15 }
  0x2c   : > { %s2265_s22 = scalar_select %p118_p6, %s2090_s17, %s2652_s0  }
  0x2d   : > { %s225_s9 = scalar_lea.sflag [#allocation3], %s224_s25  ;;  %s2118_s24 = smov 256  }
  0x2e   : > { %s2653_s4 = smov 8   ;;  %s2654_s28 = smov 128  }
  0x2f   : > { %1827 = dma.hbm_to_vmem [thread:$0]  (!%p2237_p2), %s236_s15, 512, %s238_s30, %s225_s9, %s2118_s24, %s2654_s28, %s2653_s4  }
  0x30   : > { %249 = sbr.rel (%p2223_p12) target bundleno = 1294 (0x50e), region = 36 }
  0x35   : > { %2065 = dma.done.wait (%p134_p3), [#allocation3], 256  }
  0x36   : > { %2067 = vsyncadd (%p134_p3), [#allocation3], 4294967040 }
  0x37   : > { %2069 = dma.done.wait (%p134_p3), [#allocation6], 512  }
  0x38   : > { %2071 = vsyncadd (%p134_p3), [#allocation6], 4294966784  ;;  %s261_s1 = sand.u32 1, %s2189_s23   ;;  %s2283_s4 = sand.u32 1, %s2086_s16  }
  0x39   : > { %s1717_s15 = sshll.u32 %s2283_s4, 5  ;;  %s262_s25 = scalar_lea.sflag [#allocation3], %s261_s1 }
  0x3a   : > { %s2286_s28 = scalar_lea.vmem [#allocation7], %s1717_s15 }
  0x3b   : > { %2073 = dma.done.wait (%p2206_p7), %s262_s25, 512  }
  0x3c   : > { %2075 = vsyncadd (%p2206_p7), %s262_s25, 4294966784  ;;  %v2292_v0 = vld [vmem:[#allocation5 + $0x8] sm:$0xff]  ;;  %v2294_v1 = vld [vmem:[#allocation5 + $0x18] sm:$0xff]  ;;  %vm322_vm0 = vcmask 1041409   ;;  %vm325_vm1 = vcmask 1042434   ;;  %vm328_vm2 = vcmask 1043459  }
  0x3d   : > { %v2296_v2 = vld [vmem:[#allocation5] sm:$0xff]  ;;  %347 = vmatpush.msra.mxu0 %v2292_v0  ;;  %367 = vmatpush.msra.mxu1 %v2294_v1  ;;  %v2300_v3 = vld [vmem:[#allocation5 + $0x10] sm:$0xff]  ;;  %v314_v5 = vld [vmem:[%s2286_s28 + $0x8] sm:$0x1]  ;;  %vm330_vm3 = vcmask 130048   ;;  %v2119_v25 = vmov 0  }
  0x3e   : > { %v313_v4 = vld [vmem:[%s2286_s28] sm:$0x1]  ;;  %v315_v6 = vld [vmem:[%s2286_s28 + $0x10] sm:$0x1]  ;;  %v316_v7 = vld [vmem:[%s2286_s28 + $0x18] sm:$0x1]  ;;  %1913 = vset.pattern.permute.xlu0 %v2119_v25 }
  0x3f   : > { %v321_v8 = vrot.slane %v314_v5, 7  ;;  %348 = vmatpush.msra.mxu0 %v2296_v2  ;;  %368 = vmatpush.msra.mxu1 %v2300_v3  ;;  %v324_v9 = vrot.slane %v315_v6, 6  ;;  %v327_v10 = vrot.slane %v316_v7, 5  ;;  %v488_v11 = vld [vmem:[%s2286_s28 + $0x1] sm:$0x1]  ;;  %vm377_vm4 = vcmask 1043456  }
  0x40   : > { %v489_v12 = vld [vmem:[%s2286_s28 + $0x9] sm:$0x1]  ;;  %v490_v14 = vld [vmem:[%s2286_s28 + $0x11] sm:$0x1]  ;;  %v491_v17 = vld [vmem:[%s2286_s28 + $0x19] sm:$0x1] }
  0x41   : > { %v323_v13 = vsel %vm322_vm0, %v321_v8, %v313_v4  ;;  %518 = vmatpush.msrb.mxu0 %v2292_v0  ;;  %538 = vmatpush.msrb.mxu1 %v2294_v1  ;;  %v496_v15 = vrot.slane %v489_v12, 7  ;;  %v498_v18 = vrot.slane %v490_v14, 6  ;;  %v500_v21 = vrot.slane %v491_v17, 5  ;;  %v300_v24 = vld [vmem:[%s2623_s2] sm:$0xf]  ;;  %s1718_s29 = sshll.u32 %s2283_s4, 4 }
  0x42   : > { %v326_v16 = vsel %vm325_vm1, %v324_v9, %v323_v13  ;;  %429 = vperm.xlu0 %1913, %v300_v24   ;;  %v2329_v26 = vld [vmem:[#allocation2 + $0x4] sm:$0xf]  ;;  %vm373_vm5 = vcmask 31744   ;;  %v2331_v27 = vld [vmem:[#allocation2] sm:$0xf]  ;;  %vm433_vm6 = vcmask 257024  }
  0x43   : > { %v329_v19 = vsel %vm328_vm2, %v327_v10, %v326_v16  ;;  %519 = vmatpush.msrb.mxu0 %v2296_v2  ;;  %539 = vmatpush.msrb.mxu1 %v2300_v3  ;;  %v497_v20 = vsel %vm322_vm0, %v496_v15, %v488_v11  ;;  %v2341_v30 = vld [vmem:[#allocation2 + $0xc] sm:$0xf]  ;;  %v2343_v31 = vld [vmem:[#allocation2 + $0x8] sm:$0xf]  ;;  %v645_v34 = vld [vmem:[%s2286_s28 + $0xa] sm:$0x1] }
  0x44   : > { %1719 = vmatmul.msk.f32.vlgmr.msra.gmra.mxu0 %vm330_vm3, %v329_v19  ;;  %1720 = vmatmul.msk.f32.vlgmr.msra.gmra.mxu1 %vm330_vm3, %v329_v19  ;;  %v499_v22 = vsel %vm325_vm1, %v498_v18, %v497_v20  ;;  %v646_v35 = vld [vmem:[%s2286_s28 + $0x12] sm:$0x1]  ;;  %v652_v36 = vrot.slane %v645_v34, 7  ;;  %v644_v37 = vld [vmem:[%s2286_s28 + $0x2] sm:$0x1]  ;;  %s2378_s7 = scalar_lea.vmem [#allocation8], %s1718_s29 }
  0x45   : > { %v501_v23 = vsel %vm328_vm2, %v500_v21, %v499_v22  ;;  %v647_v38 = vld [vmem:[%s2286_s28 + $0x1a] sm:$0x1]  ;;  %v654_v39 = vrot.slane %v646_v35, 6  ;;  %s2120_s13 = smov 96   ;;  %s2121_s8 = smov 32   ;;  %vm486_vm7 = vcmask 519424  }
  0x46   : > { %v653_v40 = vsel %vm322_vm0, %v652_v36, %v644_v37  ;;  %v656_v41 = vrot.slane %v647_v38, 5  ;;  %v795_v61 = vld [vmem:[%s2286_s28 + $0xb] sm:$0x1]  ;;  %s2122_s10 = smov 64   ;;  %v796_v62 = vld [vmem:[%s2286_s28 + $0x13] sm:$0x1] }
  0x47   : > { %v655_v42 = vsel %vm325_vm1, %v654_v39, %v653_v40  ;;  %v802_v63 = vrot.slane %v795_v61, 7  ;;  %v794_v4 = vld [vmem:[%s2286_s28 + $0x3] sm:$0x1]  ;;  %v797_v7 = vld [vmem:[%s2286_s28 + $0x1b] sm:$0x1]  ;;  %v804_v8 = vrot.slane %v796_v62, 6 }
  0x48   : > { %v657_v43 = vsel %vm328_vm2, %v656_v41, %v655_v42  ;;  %v806_v10 = vrot.slane %v797_v7, 5  ;;  %vm595_vm8 = vcmask 781824   ;;  %v949_v20 = vld [vmem:[%s2286_s28 + $0xc] sm:$0x1]  ;;  %v950_v21 = vld [vmem:[%s2286_s28 + $0x14] sm:$0x1] }
  0x49   : > { %v803_v9 = vsel %vm322_vm0, %v802_v63, %v794_v4  ;;  %v956_v22 = vrot.slane %v949_v20, 7  ;;  %vm642_vm9 = vcmask 1044224   ;;  %v1254_v7 = vld [vmem:[%s2286_s28 + $0x16] sm:$0x1]  ;;  %s1800_s26 = sshll.u32 %s2094_s18, 2  ;;  %s1801_s6 = sshll.u32 %s2098_s19, 3 }
  0x4a   : > { %v805_v11 = vsel %vm325_vm1, %v804_v8, %v803_v9  ;;  %v1252_v9 = vld [vmem:[%s2286_s28 + $0x6] sm:$0x1]  ;;  %s1570_s14 = sadd.s32 %s1801_s6, %s1800_s26  ;;  %s2656_s9 = sld [smem:[#allocation20_spill]] }
  0x4b   : > { %v807_v12 = vsel %vm328_vm2, %v806_v10, %v805_v11  ;;  %s1802_s12 = sshll.u32 %s1570_s14, 2  ;;  %s1574_s1 = sshll.u32 %s2378_s7, 4  ;;  %s1575_s1 = int_to_ptr.vmem [resolvable:$true] %s1574_s1 }
  0x4c   : > { %1729 = vmatmul.msk.f32.vlgmr.msrb.gmra.mxu0 %vm330_vm3, %v501_v23  ;;  %1730 = vmatmul.msk.f32.vlgmr.msrb.gmra.mxu1 %vm330_vm3, %v501_v23  ;;  %v948_v23 = vld [vmem:[%s2286_s28 + $0x4] sm:$0x1]  ;;  %s1557_s25 = scalar_lea.sflag [#allocation4], %s2283_s4 }
  0x4d   : > { %v957_v34 = vsel %vm322_vm0, %v956_v22, %v948_v23 }
  0x50   : > { %s1572_s24 = scalar_lea.hbm %s2656_s9, %s1802_s12  ;;  %s2024_s27 = scalar_lea.hbm %s2656_s9, 64 }
  0x51   : > { %s1576_s15 = sshll.u32 %s1572_s24, 4  ;;  %s1577_s15 = int_to_ptr.hbm [resolvable:$true] %s1576_s15 }
  0x52   : > { %s2018_s18 = sshra.s32 %s1577_s15, 4  ;;  %s2019_s18 = int_to_ptr.hbm [resolvable:$true] %s2018_s18 }
  0x53   : > { %s2020_s19 = scalar_lea.hbm %s2019_s18, 16  ;;  %p2025_p11 = scmp.lt.s32.totalorder %s2019_s18, %s2656_s9 }
  0x54   : > { %p2021_p3 = scmp.ne.s32.totalorder %s2019_s18, %s2020_s19  ;;  %p2026_p12 = scmp.lt.s32.totalorder %s2024_s27, %s2020_s19 }
  0x56   : > { %p2022_p7 = pnand %p2021_p3, %p2210_p8  ;;  %p2027_p13 = por %p2026_p12, %p2025_p11 }
  0x58   : > { %p2023_p10 = pneg %p2022_p7 }
  0x5a   : > { %p2028_p0 = pnand %p2027_p13, %p2023_p10 }
  0xb4   : > { %v2374_v44 = vpop.permute.xlu0 %429 }
  0xc1   : > { %v350_v28 = vpop.f32.mrf.mxu0  ;;  %v370_v29 = vpop.f32.mrf.mxu1 }
  0xc2   : > { %1721 = vmatpush.msk.msra.mxu2 %vm377_vm4, %v370_v29  ;;  %1723 = vmatpush.msk.msra.mxu3 %vm377_vm4, %v350_v28 }
  0xc3   : > { %1722 = vmatmul.msk.f32.vlgmr.msra.gmra.mxu2 %vm373_vm5, %v2329_v26  ;;  %1724 = vmatmul.msk.f32.vlgmr.msra.gmra.mxu3 %vm373_vm5, %v2331_v27 }
  0xc4   : > { %1725 = vmatpush.msk.msrb.mxu2 %vm377_vm4, %v370_v29  ;;  %1727 = vmatpush.msk.msrb.mxu3 %vm377_vm4, %v350_v28  ;;  %v951_v28 = vld [vmem:[%s2286_s28 + $0x1c] sm:$0x1]  ;;  %v958_v29 = vrot.slane %v950_v21, 6 }
  0xc5   : > { %v960_v36 = vrot.slane %v951_v28, 5 }
  0xc6   : > { %v959_v38 = vsel %vm325_vm1, %v958_v29, %v957_v34  ;;  %v1403_v29 = vld [vmem:[%s2286_s28 + $0xf] sm:$0x1]  ;;  %v1402_v34 = vld [vmem:[%s2286_s28 + $0x7] sm:$0x1] }
  0xc7   : > { %v961_v39 = vsel %vm328_vm2, %v960_v36, %v959_v38 }
  0xc9   : > { %v521_v32 = vpop.f32.mrf.mxu0  ;;  %v541_v33 = vpop.f32.mrf.mxu1 }
  0xca   : > { %1735 = vmatpush.msk.msra.mxu0 %vm377_vm4, %v541_v33  ;;  %1737 = vmatpush.msk.msra.mxu1 %vm377_vm4, %v521_v32 }
  0xcb   : > { %1726 = vmatmul.msk.f32.vlgmr.msrb.gmra.mxu2 %vm373_vm5, %v2341_v30  ;;  %1728 = vmatmul.msk.f32.vlgmr.msrb.gmra.mxu3 %vm373_vm5, %v2343_v31 }
  0xcc   : > { %1736 = vmatmul.msk.f32.vlgmr.msra.gmra.mxu0 %vm373_vm5, %v2341_v30  ;;  %1738 = vmatmul.msk.f32.vlgmr.msra.gmra.mxu1 %vm373_vm5, %v2343_v31 }
  0xcd   : > { %1731 = vmatpush.msk.msra.mxu2 %vm377_vm4, %v541_v33  ;;  %1733 = vmatpush.msk.msra.mxu3 %vm377_vm4, %v521_v32 }
  0xcf   : > { %674 = vmatpush.msrb.mxu2 %v2292_v0  ;;  %694 = vmatpush.msrb.mxu3 %v2294_v1 }
  0xd1   : > { %675 = vmatpush.msrb.mxu2 %v2296_v2  ;;  %695 = vmatpush.msrb.mxu3 %v2300_v3 }
  0xd3   : > { %1732 = vmatmul.msk.f32.vlgmr.msra.gmra.mxu2 %vm373_vm5, %v2329_v26  ;;  %1734 = vmatmul.msk.f32.vlgmr.msra.gmra.mxu3 %vm373_vm5, %v2331_v27 }
  0xdb   : > { %1739 = vmatmul.msk.f32.vlgmr.msrb.gmra.mxu2 %vm330_vm3, %v657_v43  ;;  %1740 = vmatmul.msk.f32.vlgmr.msrb.gmra.mxu3 %vm330_vm3, %v657_v43 }
 0x146   : > { %v398_v45 = vpop.f32.mrf.mxu2  ;;  %v424_v46 = vpop.f32.mrf.mxu3 }
 0x147   : > { %v425_v47 = vadd.f32 %v424_v46, %v398_v45  ;;  %v1099_v46 = vld [vmem:[%s2286_s28 + $0xd] sm:$0x1] }
 0x149   : > { %v614_v48 = vpop.f32.mrf.mxu0  ;;  %v634_v49 = vpop.f32.mrf.mxu1  ;;  %v432_v50 = vadd.f32 %v2374_v44, %v425_v47  ;;  %v1100_v47 = vld [vmem:[%s2286_s28 + $0x15] sm:$0x1] }
 0x14a   : > { %v635_v51 = vadd.f32 %v634_v49, %v614_v48  ;;  %v1106_v48 = vrot.slane %v1099_v46, 7  ;;  %v1098_v49 = vld [vmem:[%s2286_s28 + $0x5] sm:$0x1] }
 0x14b   : > { %434 = vst.msk [vmem:[%s2378_s7] sm:$0xf] %vm433_vm6, %v432_v50 }
 0x14c   : > { %v637_v52 = vadd.f32 %v635_v51, %v2374_v44 }
 0x14e   : > { %639 = vrot.lane.b32.xlu0 %v637_v52, %s2120_s13  ;;  %v455_v53 = vpop.f32.mrf.mxu2  ;;  %v478_v54 = vpop.f32.mrf.mxu3  ;;  %v1101_v52 = vld [vmem:[%s2286_s28 + $0x1d] sm:$0x1] }
 0x14f   : > { %v479_v55 = vadd.f32 %v478_v54, %v455_v53  ;;  %v1108_v53 = vrot.slane %v1100_v47, 6  ;;  %v1107_v54 = vsel %vm322_vm0, %v1106_v48, %v1098_v49 }
 0x151   : > { %v481_v56 = vadd.f32 %v479_v55, %v2374_v44  ;;  %v1110_v55 = vrot.slane %v1101_v52, 5 }
 0x156   : > { %483 = vrot.lane.b32.xlu0 %v481_v56, %s2121_s8  ;;  %v564_v57 = vpop.f32.mrf.mxu2  ;;  %v587_v58 = vpop.f32.mrf.mxu3  ;;  %v1109_v56 = vsel %vm325_vm1, %v1108_v53, %v1107_v54 }
 0x157   : > { %v588_v59 = vadd.f32 %v587_v58, %v564_v57  ;;  %v1111_v57 = vsel %vm328_vm2, %v1110_v55, %v1109_v56 }
 0x159   : > { %v590_v60 = vadd.f32 %v588_v59, %v2374_v44 }
 0x15b   : > { %592 = vrot.lane.b32.xlu2 %v590_v60, %s2122_s10 }
 0x15e   : > { %v677_v5 = vpop.f32.mrf.mxu2  ;;  %v697_v6 = vpop.f32.mrf.mxu3 }
 0x15f   : > { %1741 = vmatpush.msk.msrb.mxu0 %vm377_vm4, %v697_v6  ;;  %1743 = vmatpush.msk.msrb.mxu1 %vm377_vm4, %v677_v5 }
 0x160   : > { %1745 = vmatpush.msk.msra.mxu2 %vm377_vm4, %v697_v6  ;;  %1747 = vmatpush.msk.msra.mxu3 %vm377_vm4, %v677_v5  ;;  %v1253_v6 = vld [vmem:[%s2286_s28 + $0xe] sm:$0x1] }
 0x161   : > { %1742 = vmatmul.msk.f32.vlgmr.msrb.gmra.mxu0 %vm373_vm5, %v2329_v26  ;;  %1744 = vmatmul.msk.f32.vlgmr.msrb.gmra.mxu1 %vm373_vm5, %v2331_v27  ;;  %v1260_v8 = vrot.slane %v1253_v6, 7 }
 0x162   : > { %824 = vmatpush.msra.mxu0 %v2292_v0  ;;  %844 = vmatpush.msra.mxu1 %v2294_v1 }
 0x163   : > { %1746 = vmatmul.msk.f32.vlgmr.msra.gmra.mxu2 %vm373_vm5, %v2341_v30  ;;  %1748 = vmatmul.msk.f32.vlgmr.msra.gmra.mxu3 %vm373_vm5, %v2343_v31 }
 0x164   : > { %825 = vmatpush.msra.mxu0 %v2296_v2  ;;  %845 = vmatpush.msra.mxu1 %v2300_v3 }
 0x169   : > { %1749 = vmatmul.msk.f32.vlgmr.msra.gmra.mxu0 %vm330_vm3, %v807_v12  ;;  %1750 = vmatmul.msk.f32.vlgmr.msra.gmra.mxu1 %vm330_vm3, %v807_v12  ;;  %v1255_v12 = vld [vmem:[%s2286_s28 + $0x1e] sm:$0x1] }
 0x1b5   : > { %v593_v15 = vpop.permute.xlu2 %592 }
 0x1c0   : > { %v640_v13 = vpop.permute.xlu0 %639 }
 0x1c8   : > { %v484_v14 = vpop.permute.xlu0 %483 }
 0x1c9   : > { %487 = vst.msk [vmem:[%s2378_s7] sm:$0xf] %vm486_vm7, %v484_v14 }
 0x1ca   : > { %596 = vst.msk [vmem:[%s2378_s7] sm:$0xf] %vm595_vm8, %v593_v15 }
 0x1cb   : > { %643 = vst.msk [vmem:[%s2378_s7] sm:$0xf] %vm642_vm9, %v640_v13  ;;  %v1262_v13 = vrot.slane %v1254_v7, 6 }
 0x1de   : > { %v720_v16 = vpop.f32.mrf.mxu0  ;;  %v743_v17 = vpop.f32.mrf.mxu1 }
 0x1df   : > { %v744_v18 = vadd.f32 %v743_v17, %v720_v16  ;;  %v1261_v16 = vsel %vm322_vm0, %v1260_v8, %v1252_v9 }
 0x1e0   : > { %v1263_v20 = vsel %vm325_vm1, %v1262_v13, %v1261_v16 }
 0x1e1   : > { %v746_v19 = vadd.f32 %v744_v18, %v2374_v44  ;;  %v1264_v18 = vrot.slane %v1255_v12, 5 }
 0x1e3   : > { %747 = vst.msk [vmem:[%s2378_s7 + $0x4] sm:$0xf] %vm433_vm6, %v746_v19  ;;  %v1265_v21 = vsel %vm328_vm2, %v1264_v18, %v1263_v20 }
 0x1e6   : > { %v827_v24 = vpop.f32.mrf.mxu0  ;;  %v847_v25 = vpop.f32.mrf.mxu1 }
 0x1e7   : > { %1751 = vmatpush.msk.msrb.mxu2 %vm377_vm4, %v847_v25  ;;  %1753 = vmatpush.msk.msrb.mxu3 %vm377_vm4, %v827_v24  ;;  %v765_v32 = vpop.f32.mrf.mxu2  ;;  %v785_v33 = vpop.f32.mrf.mxu3 }
 0x1e8   : > { %1755 = vmatpush.msk.msrb.mxu0 %vm377_vm4, %v847_v25  ;;  %1757 = vmatpush.msk.msrb.mxu1 %vm377_vm4, %v827_v24  ;;  %v786_v35 = vadd.f32 %v785_v33, %v765_v32  ;;  %v1404_v32 = vld [vmem:[%s2286_s28 + $0x17] sm:$0x1]  ;;  %v1410_v33 = vrot.slane %v1403_v29, 7 }
 0x1e9   : > { %1752 = vmatmul.msk.f32.vlgmr.msrb.gmra.mxu2 %vm373_vm5, %v2329_v26  ;;  %1754 = vmatmul.msk.f32.vlgmr.msrb.gmra.mxu3 %vm373_vm5, %v2331_v27  ;;  %v1412_v38 = vrot.slane %v1404_v32, 6 }
 0x1ea   : > { %978 = vmatpush.msra.mxu2 %v2292_v0  ;;  %998 = vmatpush.msra.mxu3 %v2294_v1  ;;  %v788_v37 = vadd.f32 %v786_v35, %v2374_v44 }
 0x1eb   : > { %1756 = vmatmul.msk.f32.vlgmr.msrb.gmra.mxu0 %vm373_vm5, %v2341_v30  ;;  %1758 = vmatmul.msk.f32.vlgmr.msrb.gmra.mxu1 %vm373_vm5, %v2343_v31 }
 0x1ec   : > { %979 = vmatpush.msra.mxu2 %v2296_v2  ;;  %999 = vmatpush.msra.mxu3 %v2300_v3 }
 0x1ed   : > { %790 = vrot.lane.b32.xlu1 %v788_v37, %s2121_s8  ;;  %v1405_v37 = vld [vmem:[%s2286_s28 + $0x1f] sm:$0x1] }
 0x1f1   : > { %1759 = vmatmul.msk.f32.vlgmr.msra.gmra.mxu2 %vm330_vm3, %v961_v39  ;;  %1760 = vmatmul.msk.f32.vlgmr.msra.gmra.mxu3 %vm330_vm3, %v961_v39  ;;  %v1411_v39 = vsel %vm322_vm0, %v1410_v33, %v1402_v34 }
 0x25f   : > { %v791_v40 = vpop.permute.xlu1 %790 }
 0x260   : > { %793 = vst.msk [vmem:[%s2378_s7 + $0x4] sm:$0xf] %vm486_vm7, %v791_v40 }
 0x268   : > { %v919_v58 = vpop.f32.mrf.mxu0  ;;  %v939_v59 = vpop.f32.mrf.mxu1 }
 0x269   : > { %v940_v60 = vadd.f32 %v939_v59, %v919_v58 }
 0x26b   : > { %v942_v40 = vadd.f32 %v940_v60, %v2374_v44 }
 0x26c   : > { %v870_v41 = vpop.f32.mrf.mxu2  ;;  %v893_v42 = vpop.f32.mrf.mxu3 }
 0x26d   : > { %v894_v43 = vadd.f32 %v893_v42, %v870_v41  ;;  %v1414_v41 = vrot.slane %v1405_v37, 5  ;;  %v1413_v42 = vsel %vm325_vm1, %v1412_v38, %v1411_v39 }
 0x26f   : > { %v896_v45 = vadd.f32 %v894_v43, %v2374_v44 }
 0x271   : > { %898 = vrot.lane.b32.xlu0 %v896_v45, %s2122_s10 }
 0x274   : > { %v981_v50 = vpop.f32.mrf.mxu2  ;;  %v1001_v51 = vpop.f32.mrf.mxu3 }
 0x275   : > { %1761 = vmatpush.msk.msra.mxu0 %vm377_vm4, %v1001_v51  ;;  %1763 = vmatpush.msk.msra.mxu1 %vm377_vm4, %v981_v50 }
 0x276   : > { %1765 = vmatpush.msk.msrb.mxu2 %vm377_vm4, %v1001_v51  ;;  %1767 = vmatpush.msk.msrb.mxu3 %vm377_vm4, %v981_v50 }
 0x277   : > { %1762 = vmatmul.msk.f32.vlgmr.msra.gmra.mxu0 %vm373_vm5, %v2329_v26  ;;  %1764 = vmatmul.msk.f32.vlgmr.msra.gmra.mxu1 %vm373_vm5, %v2331_v27 }
 0x278   : > { %1128 = vmatpush.msrb.mxu0 %v2292_v0  ;;  %1148 = vmatpush.msrb.mxu1 %v2294_v1 }
 0x279   : > { %1766 = vmatmul.msk.f32.vlgmr.msrb.gmra.mxu2 %vm373_vm5, %v2341_v30  ;;  %1768 = vmatmul.msk.f32.vlgmr.msrb.gmra.mxu3 %vm373_vm5, %v2343_v31 }
 0x27a   : > { %1129 = vmatpush.msrb.mxu0 %v2296_v2  ;;  %1149 = vmatpush.msrb.mxu1 %v2300_v3 }
 0x27f   : > { %1769 = vmatmul.msk.f32.vlgmr.msrb.gmra.mxu0 %vm330_vm3, %v1111_v57  ;;  %1770 = vmatmul.msk.f32.vlgmr.msrb.gmra.mxu1 %vm330_vm3, %v1111_v57 }
 0x2e3   : > { %v899_v61 = vpop.permute.xlu0 %898 }
 0x2e4   : > { %901 = vst.msk [vmem:[%s2378_s7 + $0x4] sm:$0xf] %vm595_vm8, %v899_v61 }
 0x2f4   : > { %v1024_v62 = vpop.f32.mrf.mxu0  ;;  %v1047_v63 = vpop.f32.mrf.mxu1 }
 0x2f5   : > { %v1048_v4 = vadd.f32 %v1047_v63, %v1024_v62 }
 0x2f7   : > { %v1050_v5 = vadd.f32 %v1048_v4, %v2374_v44 }
 0x2f9   : > { %1051 = vst.msk [vmem:[%s2378_s7 + $0x8] sm:$0xf] %vm433_vm6, %v1050_v5 }
 0x2fc   : > { %v1131_v10 = vpop.f32.mrf.mxu0  ;;  %v1151_v11 = vpop.f32.mrf.mxu1 }
 0x2fd   : > { %1771 = vmatpush.msk.msra.mxu2 %vm377_vm4, %v1151_v11  ;;  %1773 = vmatpush.msk.msra.mxu3 %vm377_vm4, %v1131_v10  ;;  %v1069_v14 = vpop.f32.mrf.mxu2  ;;  %v1089_v15 = vpop.f32.mrf.mxu3 }
 0x2fe   : > { %1775 = vmatpush.msk.msra.mxu0 %vm377_vm4, %v1151_v11  ;;  %1777 = vmatpush.msk.msra.mxu1 %vm377_vm4, %v1131_v10  ;;  %v1090_v17 = vadd.f32 %v1089_v15, %v1069_v14 }
 0x2ff   : > { %1772 = vmatmul.msk.f32.vlgmr.msra.gmra.mxu2 %vm373_vm5, %v2329_v26  ;;  %1774 = vmatmul.msk.f32.vlgmr.msra.gmra.mxu3 %vm373_vm5, %v2331_v27 }
 0x300   : > { %1282 = vmatpush.msrb.mxu2 %v2292_v0  ;;  %1302 = vmatpush.msrb.mxu3 %v2294_v1  ;;  %v1092_v19 = vadd.f32 %v1090_v17, %v2374_v44 }
 0x301   : > { %1776 = vmatmul.msk.f32.vlgmr.msra.gmra.mxu0 %vm373_vm5, %v2341_v30  ;;  %1778 = vmatmul.msk.f32.vlgmr.msra.gmra.mxu1 %vm373_vm5, %v2343_v31 }
 0x302   : > { %1283 = vmatpush.msrb.mxu2 %v2296_v2  ;;  %1303 = vmatpush.msrb.mxu3 %v2300_v3 }
 0x303   : > { %1094 = vrot.lane.b32.xlu1 %v1092_v19, %s2121_s8 }
 0x307   : > { %1779 = vmatmul.msk.f32.vlgmr.msrb.gmra.mxu2 %vm330_vm3, %v1265_v21  ;;  %1780 = vmatmul.msk.f32.vlgmr.msrb.gmra.mxu3 %vm330_vm3, %v1265_v21 }
 0x375   : > { %v1095_v22 = vpop.permute.xlu1 %1094 }
 0x376   : > { %1097 = vst.msk [vmem:[%s2378_s7 + $0x8] sm:$0xf] %vm486_vm7, %v1095_v22 }
 0x37e   : > { %v1243_v43 = vpop.f32.mrf.mxu1 }
 0x382   : > { %v1174_v23 = vpop.f32.mrf.mxu2  ;;  %v1197_v24 = vpop.f32.mrf.mxu3 }
 0x383   : > { %v1198_v25 = vadd.f32 %v1197_v24, %v1174_v23 }
 0x385   : > { %v1200_v28 = vadd.f32 %v1198_v25, %v2374_v44 }
 0x387   : > { %1202 = vrot.lane.b32.xlu1 %v1200_v28, %s2122_s10 }
 0x38a   : > { %v1285_v35 = vpop.f32.mrf.mxu2  ;;  %v1305_v36 = vpop.f32.mrf.mxu3 }
 0x38b   : > { %1781 = vmatpush.msk.msrb.mxu0 %vm377_vm4, %v1305_v36  ;;  %1783 = vmatpush.msk.msrb.mxu1 %vm377_vm4, %v1285_v35 }
 0x38c   : > { %1785 = vmatpush.msk.msra.mxu2 %vm377_vm4, %v1305_v36  ;;  %1787 = vmatpush.msk.msra.mxu3 %vm377_vm4, %v1285_v35 }
 0x38d   : > { %1782 = vmatmul.msk.f32.vlgmr.msrb.gmra.mxu0 %vm373_vm5, %v2329_v26  ;;  %1784 = vmatmul.msk.f32.vlgmr.msrb.gmra.mxu1 %vm373_vm5, %v2331_v27 }
 0x38e   : > { %1432 = vmatpush.msra.mxu0 %v2292_v0  ;;  %1452 = vmatpush.msra.mxu1 %v2294_v1  ;;  %v1415_v0 = vsel %vm328_vm2, %v1414_v41, %v1413_v42  ;;  %v1223_v1 = vpop.f32.mrf.mxu0 }
 0x38f   : > { %944 = vrot.lane.b32.xlu1 %v942_v40, %s2120_s13  ;;  %1786 = vmatmul.msk.f32.vlgmr.msra.gmra.mxu2 %vm373_vm5, %v2341_v30  ;;  %v1244_v45 = vadd.f32 %v1243_v43, %v1223_v1 }
 0x390   : > { %1433 = vmatpush.msra.mxu0 %v2296_v2  ;;  %1453 = vmatpush.msra.mxu1 %v2300_v3 }
 0x391   : > { %1788 = vmatmul.msk.f32.vlgmr.msra.gmra.mxu3 %vm373_vm5, %v2343_v31  ;;  %v1246_v61 = vadd.f32 %v1244_v45, %v2374_v44 }
 0x395   : > { %1789 = vmatmul.msk.f32.vlgmr.msra.gmra.mxu0 %vm330_vm3, %v1415_v0  ;;  %1790 = vmatmul.msk.f32.vlgmr.msra.gmra.mxu1 %vm330_vm3, %v1415_v0 }
 0x3f9   : > { %v1203_v46 = vpop.permute.xlu1 %1202 }
 0x3fa   : > { %1205 = vst.msk [vmem:[%s2378_s7 + $0x8] sm:$0xf] %vm595_vm8, %v1203_v46 }
 0x401   : > { %v945_v47 = vpop.permute.xlu1 %944 }
 0x402   : > { %947 = vst.msk [vmem:[%s2378_s7 + $0x4] sm:$0xf] %vm642_vm9, %v945_v47 }
 0x40a   : > { %v1328_v2 = vpop.f32.mrf.mxu0  ;;  %v1351_v3 = vpop.f32.mrf.mxu1 }
 0x40b   : > { %v1352_v48 = vadd.f32 %v1351_v3, %v1328_v2 }
 0x40d   : > { %v1354_v49 = vadd.f32 %v1352_v48, %v2374_v44 }
 0x40f   : > { %1355 = vst.msk [vmem:[%s2378_s7 + $0xc] sm:$0xf] %vm433_vm6, %v1354_v49 }
 0x412   : > { %v1435_v50 = vpop.f32.mrf.mxu0  ;;  %v1455_v51 = vpop.f32.mrf.mxu1 }
 0x413   : > { %1791 = vmatpush.msk.msrb.mxu2 %vm377_vm4, %v1455_v51  ;;  %1793 = vmatpush.msk.msrb.mxu3 %vm377_vm4, %v1435_v50  ;;  %v1373_v52 = vpop.f32.mrf.mxu2 }
 0x414   : > { %1795 = vmatpush.msk.msrb.mxu0 %vm377_vm4, %v1455_v51  ;;  %1797 = vmatpush.msk.msrb.mxu1 %vm377_vm4, %v1435_v50  ;;  %v1393_v53 = vpop.f32.mrf.mxu3 }
 0x415   : > { %1792 = vmatmul.msk.f32.vlgmr.msrb.gmra.mxu2 %vm373_vm5, %v2329_v26  ;;  %1794 = vmatmul.msk.f32.vlgmr.msrb.gmra.mxu3 %vm373_vm5, %v2331_v27  ;;  %v1394_v54 = vadd.f32 %v1393_v53, %v1373_v52 }
 0x416   : > { %1796 = vmatmul.msk.f32.vlgmr.msrb.gmra.mxu0 %vm373_vm5, %v2341_v30  ;;  %1798 = vmatmul.msk.f32.vlgmr.msrb.gmra.mxu1 %vm373_vm5, %v2343_v31 }
 0x417   : > { %v1396_v55 = vadd.f32 %v1394_v54, %v2374_v44 }
 0x419   : > { %1398 = vrot.lane.b32.xlu2 %v1396_v55, %s2121_s8 }
 0x473   : > { %v1399_v56 = vpop.permute.xlu2 %1398 }
 0x474   : > { %1401 = vst.msk [vmem:[%s2378_s7 + $0xc] sm:$0xf] %vm486_vm7, %v1399_v56 }
 0x493   : > { %v1527_v26 = vpop.f32.mrf.mxu0  ;;  %v1547_v57 = vpop.f32.mrf.mxu1 }
 0x494   : > { %v1548_v27 = vadd.f32 %v1547_v57, %v1527_v26 }
 0x496   : > { %v1550_v58 = vadd.f32 %v1548_v27, %v2374_v44 }
 0x498   : > { %1552 = vrot.lane.b32.xlu0 %v1550_v58, %s2120_s13  ;;  %v1478_v30 = vpop.f32.mrf.mxu2  ;;  %v1501_v31 = vpop.f32.mrf.mxu3 }
 0x499   : > { %v1502_v59 = vadd.f32 %v1501_v31, %v1478_v30 }
 0x49b   : > { %v1504_v60 = vadd.f32 %v1502_v59, %v2374_v44 }
 0x49d   : > { %1506 = vrot.lane.b32.xlu2 %v1504_v60, %s2122_s10 }
 0x4a5   : > { %1248 = vrot.lane.b32.xlu2 %v1246_v61, %s2120_s13 }
 0x4f7   : > { %v1507_v62 = vpop.permute.xlu2 %1506 }
 0x4f8   : > { %1509 = vst.msk [vmem:[%s2378_s7 + $0xc] sm:$0xf] %vm595_vm8, %v1507_v62 }
 0x4ff   : > { %v1249_v63 = vpop.permute.xlu2 %1248 }
 0x500   : > { %1251 = vst.msk [vmem:[%s2378_s7 + $0x8] sm:$0xf] %vm642_vm9, %v1249_v63 }
 0x50a   : > { %v1553_v44 = vpop.permute.xlu0 %1552 }
 0x50b   : > { %1555 = vst.msk [vmem:[%s2378_s7 + $0xc] sm:$0xf] %vm642_vm9, %v1553_v44 }
 0x50c   : > { %2031 = shalt.err (!%p2028_p0)
}
 0x50d   : > { %1815 = dma.vmem_to_hbm [thread:$0]  (%p2210_p8), %s1575_s1, 256, %s1577_s15, %s1557_s25  }
 0x50e PF: > { %s2657_s4 = sld [smem:[#allocation14_spill]] }
 0x50f   : > { %s2658_s7 = sld [smem:[#allocation13_spill]] }
 0x514   : > { %p1837_p1 = scmp.ge.s32.totalorder %s2657_s4, 2 }
 0x515   : > { %s1588_s10 = sand.u32 1, %s2658_s7  }
 0x516   : > { %p1829_p2 = pnand %p1837_p1, %p2214_p9  ;;  %s1589_s26 = scalar_lea.sflag [#allocation4], %s1588_s10 }
 0x518   : > { %p1830_p4 = pneg %p1829_p2 }
 0x51a   : > { %2077 = dma.done.wait (%p1830_p4), %s1589_s26, 256  }
 0x51b   : > { %2079 = vsyncadd (%p1830_p4), %s1589_s26, 4294967040  ;;  %s19_s6 = sadd.s32 1, %s2657_s4   ;;  %s2660_s14 = sld [smem:[#allocation17_spill]] }
 0x51c   : > { %p16_p5 = scmp.ge.s32.totalorder %s19_s6, 6   ;;  %s2661_s15 = smov %s2086_s16 }
 0x51d   : > { %s2662_s16 = smov %s2090_s17  ;;  %s2663_s17 = smov %s2265_s22 }
 0x51e   : > { %s2664_s18 = smov %s2102_s20  ;;  %s2665_s19 = smov %s2106_s21 }
 0x51f   : > { %s2667_s21 = smov %s2674_s11  ;;  %s2668_s22 = smov %s19_s6 }
 0x520   :  { %18 = sbr.rel (!%p16_p5) target bundleno = 11 (0xb), region = 96 }
 0x521   : > { %s2666_s20 = smov %s2660_s14 }
 0x525   :  { %1595 = vsyncpa [#allocation3], 1 }
 0x526   :  { %1597 = vsyncpa [#allocation3 + $0x1], 1 }
 0x527   :  { %1598 = vsyncpa [#allocation6], 1 }
 0x528   :  { %1599 = vsyncpa [#allocation4], 1 }
 0x529   :  { %1601 = vsyncpa [#allocation4 + $0x1], 1 }

</bundles_post_ra>
